<compile_context>
chip_gen: v7x
topology: tpu7x:2x2x1
jax: 0.10.0
libtpu: 0.0.40
codegen_flags: <defaults>
</compile_context>

<pallas_src>
import functools

import jax
import jax.numpy as jnp
from jax.experimental import pallas as pl
from jax.experimental.pallas import tpu as pltpu


NEG_SLOPE = 0.125


def _round_up(x, m):
    return (x + m - 1) // m * m


def _tile_vmem_bytes(TH, W, Wp2, Cin, Cp):
    """Rough per-grid-step VMEM estimate (f32), used to size tiles / limits."""
    f32 = 4
    cin_l = max(Cin, 128)                       # lane padding of narrow Cin
    x_buf = (TH + 4) * Wp2 * cin_l * f32
    h_buf = (TH + 2) * Wp2 * Cp * f32
    acc = ((TH + 2) + TH) * Wp2 * 3 * Cp * f32  # matmul accumulators
    io = 2 * (TH * W * cin_l + 4 * W * cin_l + TH * W * Cp) * f32  # dbl-buffered
    wts = (3 * Cin * 3 * Cp + 3 * Cp * 3 * Cp + 2 * Cp) * f32
    return x_buf + h_buf + acc + io + wts


def _pick_row_tile(H, W, Cin, Cp, budget=24 * 2**20):
    """Largest even row tile dividing H that keeps the step under ~24 MiB
    (safe even for v7x's 64 MiB VMEM per TensorCore)."""
    Wp2 = _round_up(W + 2, 8)
    best = 2
    for th in range(2, H + 1, 2):
        if H % th == 0 and _tile_vmem_bytes(th, W, Wp2, Cin, Cp) <= budget:
            best = th
    return best


def _fused_unet_conv2_kernel(
    x_core_ref, x_top_ref, x_bot_ref,      # input row tile + 2-row halos (NHWC)
    w1_ref, b1_ref, w2_ref, b2_ref,        # packed conv parameters
    o_ref,                                 # output row tile (1, TH, W, Cp)
    x_buf, h_buf,                          # VMEM scratch
    *, TH, W, Wp2, Cin, Cp, slope):
    j = pl.program_id(1)
    nj = pl.num_programs(1)
    f32 = jnp.float32

    # ---- 1. assemble the zero-padded input slab (TH+4, Wp2, Cin) in VMEM ----
    # Only pad columns w'=0 and w'=W+1 are ever read by the dx stripes; the
    # rest of the Wp2 padding produces matmul columns that are never read
    # back, so it can stay uninitialised.  Re-zero every step because the
    # scratch persists across grid iterations.
    x_buf[:, 0:1, :] = jnp.zeros((TH + 4, 1, Cin), x_buf.dtype)
    x_buf[:, W + 1:W + 2, :] = jnp.zeros((TH + 4, 1, Cin), x_buf.dtype)
    x_buf[2:TH + 2, 1:W + 1, :] = x_core_ref[0]

    @pl.when(j > 0)
    def _():                                  # 2 real rows above this tile
        x_buf[0:2, 1:W + 1, :] = x_top_ref[0]

    @pl.when(j == 0)
    def _():                                  # image top: zero padding
        x_buf[0:2, 1:W + 1, :] = jnp.zeros((2, W, Cin), x_buf.dtype)

    @pl.when(j < nj - 1)
    def _():                                  # 2 real rows below this tile
        x_buf[TH + 2:TH + 4, 1:W + 1, :] = x_bot_ref[0]

    @pl.when(j == nj - 1)
    def _():                                  # image bottom: zero padding
        x_buf[TH + 2:TH + 4, 1:W + 1, :] = jnp.zeros((2, W, Cin), x_buf.dtype)

    def conv3x3(buf, w_ref, rows, K):
        """3 MXU matmuls (one per dy), dx folded into the weight N dim."""
        m = rows * Wp2
        acc = None
        for dy in range(3):
            slab = buf[dy:dy + rows, :, :].reshape(m, K)
            part = jnp.dot(slab, w_ref[dy], preferred_element_type=f32)
            acc = part if acc is None else acc + part
        s3 = acc.reshape(rows, Wp2, 3 * Cp)
        # combine the three dx stripes with shifted adds on output-sized tiles
        return (s3[:, 0:W, 0:Cp]                 # dx = 0 stripe
                + s3[:, 1:W + 1, Cp:2 * Cp]      # dx = 1 stripe
                + s3[:, 2:W + 2, 2 * Cp:3 * Cp])  # dx = 2 stripe

    # ---- 2. conv1 + LeakyReLU on TH+2 rows (conv2 needs a 1-row halo) -------
    pre1 = b1_ref[0].astype(f32) + conv3x3(x_buf, w1_ref, TH + 2, Cin)
    act1 = jnp.where(pre1 >= 0, pre1, slope * pre1)

    # intermediate row tile, stored zero-padded in VMEM (never touches HBM)
    h_buf[:, 0:1, :] = jnp.zeros((TH + 2, 1, Cp), h_buf.dtype)
    h_buf[:, W + 1:W + 2, :] = jnp.zeros((TH + 2, 1, Cp), h_buf.dtype)
    h_buf[:, 1:W + 1, :] = act1.astype(h_buf.dtype)

    @pl.when(j == 0)      # conv2's zero padding of the intermediate (top row)
    def _():
        h_buf[0:1, 1:W + 1, :] = jnp.zeros((1, W, Cp), h_buf.dtype)

    @pl.when(j == nj - 1)  # ... and bottom row
    def _():
        h_buf[TH + 1:TH + 2, 1:W + 1, :] = jnp.zeros((1, W, Cp), h_buf.dtype)

    # ---- 3. conv2 + LeakyReLU on the TH output rows --------------------------
    pre2 = b2_ref[0].astype(f32) + conv3x3(h_buf, w2_ref, TH, Cp)
    o_ref[0] = jnp.where(pre2 >= 0, pre2, slope * pre2).astype(o_ref.dtype)


def pack_unet_conv2_params(params):
    """One-time repack of PyTorch-layout parameters for the fused kernel.

    params = ((w1, b1), (w2, b2)) with w in OIHW layout (as nn.Conv2d stores
    them).  Hoisted out of the forward path.
    """
    (w1, b1), (w2, b2) = params
    Cout, Cin = int(w1.shape[0]), int(w1.shape[1])
    Cp = _round_up(Cout, 128)        # lane-dense channel padding

    def pack(w, k_ch):
        hwio = jnp.transpose(w.astype(jnp.float32), (2, 3, 1, 0))   # (3,3,ci,co)
        ci = hwio.shape[2]
        hwio = jnp.pad(hwio, ((0, 0), (0, 0), (0, k_ch - ci), (0, Cp - Cout)))
        # (dy, dx, ci, co) -> (dy, ci, dx*Cp + co): dx folded into the N dim
        return jnp.transpose(hwio, (0, 2, 1, 3)).reshape(3, k_ch, 3 * Cp)

    return dict(
        w1p=pack(w1, Cin),           # (3, Cin, 3*Cp)
        w2p=pack(w2, Cp),            # (3, Cp , 3*Cp): K = padded interm. chans
        b1p=jnp.pad(b1.astype(jnp.float32), (0, Cp - Cout)).reshape(1, Cp),
        b2p=jnp.pad(b2.astype(jnp.float32), (0, Cp - Cout)).reshape(1, Cp),
        cin=Cin, cout=Cout, cp=Cp)


def unet_conv2_forward(x_nchw, packed, *, row_tile=None, mxu_dtype=jnp.float32):
    """unetConv2.forward (is_batchnorm=False): (N,Cin,H,W) -> (N,Cout,H,W)."""
    Cin, Cout, Cp = packed["cin"], packed["cout"], packed["cp"]
    N, C, H, W = x_nchw.shape
    assert C == Cin and H % 2 == 0

    # Single NCHW->NHWC layout pass at the module boundary.  (In a full
    # network keep activations NHWC end-to-end so this disappears.)
    # Casting here also narrows the input DMA bytes on the bf16 path.
    x = jnp.transpose(x_nchw, (0, 2, 3, 1)).astype(mxu_dtype)

    TH = row_tile if row_tile is not None else _pick_row_tile(H, W, Cin, Cp)
    assert H % TH == 0 and TH % 2 == 0, "row_tile must be an even divisor of H"
    Wp2 = _round_up(W + 2, 8)     # padded slab width keeps reshapes layout-cheap
    nj = H // TH

    w1p = packed["w1p"].astype(mxu_dtype)
    w2p = packed["w2p"].astype(mxu_dtype)

    kernel = functools.partial(
        _fused_unet_conv2_kernel,
        TH=TH, W=W, Wp2=Wp2, Cin=Cin, Cp=Cp, slope=NEG_SLOPE)

    vmem_limit = max(32 * 2**20,
                     int(1.5 * _tile_vmem_bytes(TH, W, Wp2, Cin, Cp)))

    out = pl.pallas_call(
        kernel,
        out_shape=jax.ShapeDtypeStruct((N, H, W, Cp), jnp.float32),
        grid_spec=pltpu.PrefetchScalarGridSpec(
            num_scalar_prefetch=0,
            grid=(N, nj),
            in_specs=[
                # TH core rows of this tile
                pl.BlockSpec((1, TH, W, Cin), lambda n, j: (n, j, 0, 0)),
                # 2-row halo above (index clamped at the top; zeroed in-kernel)
                pl.BlockSpec(
                    (1, 2, W, Cin),
                    lambda n, j: (n, jnp.maximum(j * (TH // 2) - 1, 0), 0, 0)),
                # 2-row halo below (index clamped at the bottom; zeroed in-kernel)
                pl.BlockSpec(
                    (1, 2, W, Cin),
                    lambda n, j: (n, jnp.minimum((j + 1) * (TH // 2),
                                                 H // 2 - 1), 0, 0)),
                pl.BlockSpec((3, Cin, 3 * Cp), lambda n, j: (0, 0, 0)),
                pl.BlockSpec((1, Cp), lambda n, j: (0, 0)),
                pl.BlockSpec((3, Cp, 3 * Cp), lambda n, j: (0, 0, 0)),
                pl.BlockSpec((1, Cp), lambda n, j: (0, 0)),
            ],
            out_specs=pl.BlockSpec((1, TH, W, Cp), lambda n, j: (n, j, 0, 0)),
            scratch_shapes=[
                pltpu.VMEM((TH + 4, Wp2, Cin), mxu_dtype),  # padded input slab
                pltpu.VMEM((TH + 2, Wp2, Cp), mxu_dtype),   # intermediate tile
            ],
        ),
        compiler_params=pltpu.CompilerParams(
            dimension_semantics=("parallel", "parallel"),
            vmem_limit_bytes=vmem_limit),
    )(x, x, x, w1p, packed["b1p"], w2p, packed["b2p"])

    # drop channel padding, back to the module's NCHW layout
    return jnp.transpose(out[..., :Cout], (0, 3, 1, 2))


def init_conv_params(key, in_ch, out_ch, k=3):
    """Deterministic PyTorch-style (kaiming-uniform-ish) init. Weight in OIHW."""
    kw, kb = jax.random.split(key)
    fan_in = in_ch * k * k
    bound = 1.0 / jnp.sqrt(fan_in)
    w = jax.random.uniform(kw, (out_ch, in_ch, k, k), jnp.float32, -bound, bound)
    b = jax.random.uniform(kb, (out_ch,), jnp.float32, -bound, bound)
    return w, b


def _reference_forward(x_nchw, params):
    """Pure-JAX reference (lax conv) for the correctness check."""
    (w1, b1), (w2, b2) = params

    def conv(x, w, b):
        y = jax.lax.conv_general_dilated(
            x, w, window_strides=(1, 1), padding=((1, 1), (1, 1)),
            dimension_numbers=("NCHW", "OIHW", "NCHW"))
        y = y + b.reshape(1, -1, 1, 1)
        return jnp.where(y >= 0, y, NEG_SLOPE * y)

    return conv(conv(x_nchw, w1, b1), w2, b2)


if __name__ == "__main__":
    key = jax.random.PRNGKey(0)
    k_x, k_c1, k_c2 = jax.random.split(key, 3)

    N, Cin, Cout, H, W = 2, 4, 8, 16, 16
    x = jax.random.normal(k_x, (N, Cin, H, W), jnp.float32)

    params = (init_conv_params(k_c1, Cin, Cout),
              init_conv_params(k_c2, Cout, Cout))
    packed = pack_unet_conv2_params(params)   # one-time weight repack

    ref = _reference_forward(x, params)

    # multi-row-tile path (grid (2, 4)): exercises top / middle / bottom halos
    fwd_tiled = jax.jit(lambda v: unet_conv2_forward(v, packed, row_tile=4))
    out = jax.block_until_ready(fwd_tiled(x))
    assert out.shape == (N, Cout, H, W)
    assert jnp.allclose(out, ref, atol=1e-4, rtol=1e-4), "mismatch (row_tile=4)"

    # single-tile-per-image path (auto row tile)
    fwd_auto = jax.jit(lambda v: unet_conv2_forward(v, packed))
    out2 = jax.block_until_ready(fwd_auto(x))
    assert jnp.allclose(out2, ref, atol=1e-4, rtol=1e-4), "mismatch (auto tile)"

    print("KERNEL_OK")
</pallas_src>

<mosaic_0001>
module attributes {stable_mosaic.version = 11 : i64} {
  func.func @_fused_unet_conv2_kernel(%arg0: i32, %arg1: i32, %arg2: memref<1x4x16x4xf32, #tpu.memory_space<vmem>>, %arg3: memref<1x2x16x4xf32, #tpu.memory_space<vmem>>, %arg4: memref<1x2x16x4xf32, #tpu.memory_space<vmem>>, %arg5: memref<3x4x384xf32, #tpu.memory_space<vmem>>, %arg6: memref<1x128xf32, #tpu.memory_space<vmem>>, %arg7: memref<3x128x384xf32, #tpu.memory_space<vmem>>, %arg8: memref<1x128xf32, #tpu.memory_space<vmem>>, %arg9: memref<1x4x16x128xf32, #tpu.memory_space<vmem>>, %arg10: memref<8x24x4xf32, #tpu.memory_space<vmem>>, %arg11: memref<6x24x128xf32, #tpu.memory_space<vmem>>) attributes {dimension_semantics = [#tpu.dimension_semantics<parallel>, #tpu.dimension_semantics<parallel>], iteration_bounds = array<i64: 2, 4>, scalar_prefetch = 0 : i64, scratch_operands = 2 : i64, tpu.core_type = #tpu.core_type<tc>, window_params = [{transform_indices = @transform_0, window_bounds = array<i64: 1, 4, 16, 4>}, {transform_indices = @transform_1, window_bounds = array<i64: 1, 2, 16, 4>}, {transform_indices = @transform_2, window_bounds = array<i64: 1, 2, 16, 4>}, {pipeline_mode = #tpu.pipeline_mode<synchronous>, transform_indices = @transform_3, window_bounds = array<i64: 3, 4, 384>}, {pipeline_mode = #tpu.pipeline_mode<synchronous>, transform_indices = @transform_4, window_bounds = array<i64: 1, 128>}, {pipeline_mode = #tpu.pipeline_mode<synchronous>, transform_indices = @transform_5, window_bounds = array<i64: 3, 128, 384>}, {pipeline_mode = #tpu.pipeline_mode<synchronous>, transform_indices = @transform_6, window_bounds = array<i64: 1, 128>}, {transform_indices = @transform_7, window_bounds = array<i64: 1, 4, 16, 128>}]} {
    %cst = arith.constant 0.000000e+00 : f32
    %0 = vector.broadcast %cst : f32 to vector<8x1x4xf32>
    %c0 = arith.constant 0 : index
    %c0_0 = arith.constant 0 : index
    %c0_1 = arith.constant 0 : index
    %1 = vector.load %arg10[%c0, %c0_0, %c0_1] : memref<8x24x4xf32, #tpu.memory_space<vmem>>, vector<8x1x4xf32>
    tpu.vector_store %arg10[%c0, %c0_0, %c0_1], %0 {strides = array<i32>} : memref<8x24x4xf32, #tpu.memory_space<vmem>>, vector<8x1x4xf32>,
    %cst_2 = arith.constant 0.000000e+00 : f32
    %2 = vector.broadcast %cst_2 : f32 to vector<8x1x4xf32>
    %c0_3 = arith.constant 0 : index
    %c17 = arith.constant 17 : index
    %c0_4 = arith.constant 0 : index
    %3 = vector.load %arg10[%c0_3, %c17, %c0_4] : memref<8x24x4xf32, #tpu.memory_space<vmem>>, vector<8x1x4xf32>
    tpu.vector_store %arg10[%c0_3, %c17, %c0_4], %2 {strides = array<i32>} : memref<8x24x4xf32, #tpu.memory_space<vmem>>, vector<8x1x4xf32>,
    %c0_5 = arith.constant 0 : index
    %c0_6 = arith.constant 0 : index
    %c0_7 = arith.constant 0 : index
    %c0_8 = arith.constant 0 : index
    %4 = vector.load %arg2[%c0_5, %c0_6, %c0_7, %c0_8] : memref<1x4x16x4xf32, #tpu.memory_space<vmem>>, vector<1x4x16x4xf32>
    %5 = vector.shape_cast %4 : vector<1x4x16x4xf32> to vector<4x16x4xf32>
    %c2 = arith.constant 2 : index
    %c1 = arith.constant 1 : index
    %c0_9 = arith.constant 0 : index
    %6 = vector.load %arg10[%c2, %c1, %c0_9] : memref<8x24x4xf32, #tpu.memory_space<vmem>>, vector<4x16x4xf32>
    tpu.vector_store %arg10[%c2, %c1, %c0_9], %5 {strides = array<i32>} : memref<8x24x4xf32, #tpu.memory_space<vmem>>, vector<4x16x4xf32>,
    %c0_i32 = arith.constant 0 : i32
    %7 = arith.cmpi sgt, %arg1, %c0_i32 : i32
    %8 = arith.extui %7 : i1 to i32
    %c0_i32_10 = arith.constant 0 : i32
    %9 = arith.cmpi ne, %8, %c0_i32_10 : i32
    scf.if %9 {
      %c0_85 = arith.constant 0 : index
      %c0_86 = arith.constant 0 : index
      %c0_87 = arith.constant 0 : index
      %c0_88 = arith.constant 0 : index
      %99 = vector.load %arg3[%c0_85, %c0_86, %c0_87, %c0_88] : memref<1x2x16x4xf32, #tpu.memory_space<vmem>>, vector<1x2x16x4xf32>
      %100 = vector.shape_cast %99 : vector<1x2x16x4xf32> to vector<2x16x4xf32>
      %c0_89 = arith.constant 0 : index
      %c1_90 = arith.constant 1 : index
      %c0_91 = arith.constant 0 : index
      %101 = vector.load %arg10[%c0_89, %c1_90, %c0_91] : memref<8x24x4xf32, #tpu.memory_space<vmem>>, vector<2x16x4xf32>
      tpu.vector_store %arg10[%c0_89, %c1_90, %c0_91], %100 {strides = array<i32>} : memref<8x24x4xf32, #tpu.memory_space<vmem>>, vector<2x16x4xf32>,
    } else {
    }
    %c0_i32_11 = arith.constant 0 : i32
    %10 = arith.cmpi eq, %arg1, %c0_i32_11 : i32
    %11 = arith.extui %10 : i1 to i32
    %c0_i32_12 = arith.constant 0 : i32
    %12 = arith.cmpi ne, %11, %c0_i32_12 : i32
    scf.if %12 {
      %cst_85 = arith.constant 0.000000e+00 : f32
      %99 = vector.broadcast %cst_85 : f32 to vector<2x16x4xf32>
      %c0_86 = arith.constant 0 : index
      %c1_87 = arith.constant 1 : index
      %c0_88 = arith.constant 0 : index
      %100 = vector.load %arg10[%c0_86, %c1_87, %c0_88] : memref<8x24x4xf32, #tpu.memory_space<vmem>>, vector<2x16x4xf32>
      tpu.vector_store %arg10[%c0_86, %c1_87, %c0_88], %99 {strides = array<i32>} : memref<8x24x4xf32, #tpu.memory_space<vmem>>, vector<2x16x4xf32>,
    } else {
    }
    %c3_i32 = arith.constant 3 : i32
    %13 = arith.cmpi slt, %arg1, %c3_i32 : i32
    %14 = arith.extui %13 : i1 to i32
    %c0_i32_13 = arith.constant 0 : i32
    %15 = arith.cmpi ne, %14, %c0_i32_13 : i32
    scf.if %15 {
      %c0_85 = arith.constant 0 : index
      %c0_86 = arith.constant 0 : index
      %c0_87 = arith.constant 0 : index
      %c0_88 = arith.constant 0 : index
      %99 = vector.load %arg4[%c0_85, %c0_86, %c0_87, %c0_88] : memref<1x2x16x4xf32, #tpu.memory_space<vmem>>, vector<1x2x16x4xf32>
      %100 = vector.shape_cast %99 : vector<1x2x16x4xf32> to vector<2x16x4xf32>
      %c6 = arith.constant 6 : index
      %c1_89 = arith.constant 1 : index
      %c0_90 = arith.constant 0 : index
      %101 = vector.load %arg10[%c6, %c1_89, %c0_90] : memref<8x24x4xf32, #tpu.memory_space<vmem>>, vector<2x16x4xf32>
      tpu.vector_store %arg10[%c6, %c1_89, %c0_90], %100 {strides = array<i32>} : memref<8x24x4xf32, #tpu.memory_space<vmem>>, vector<2x16x4xf32>,
    } else {
    }
    %c3_i32_14 = arith.constant 3 : i32
    %16 = arith.cmpi eq, %arg1, %c3_i32_14 : i32
    %17 = arith.extui %16 : i1 to i32
    %c0_i32_15 = arith.constant 0 : i32
    %18 = arith.cmpi ne, %17, %c0_i32_15 : i32
    scf.if %18 {
      %cst_85 = arith.constant 0.000000e+00 : f32
      %99 = vector.broadcast %cst_85 : f32 to vector<2x16x4xf32>
      %c6 = arith.constant 6 : index
      %c1_86 = arith.constant 1 : index
      %c0_87 = arith.constant 0 : index
      %100 = vector.load %arg10[%c6, %c1_86, %c0_87] : memref<8x24x4xf32, #tpu.memory_space<vmem>>, vector<2x16x4xf32>
      tpu.vector_store %arg10[%c6, %c1_86, %c0_87], %99 {strides = array<i32>} : memref<8x24x4xf32, #tpu.memory_space<vmem>>, vector<2x16x4xf32>,
    } else {
    }
    %c0_16 = arith.constant 0 : index
    %c0_17 = arith.constant 0 : index
    %19 = vector.load %arg6[%c0_16, %c0_17] : memref<1x128xf32, #tpu.memory_space<vmem>>, vector<1x128xf32>
    %20 = vector.shape_cast %19 : vector<1x128xf32> to vector<128xf32>
    %c0_18 = arith.constant 0 : index
    %c0_19 = arith.constant 0 : index
    %c0_20 = arith.constant 0 : index
    %21 = vector.load %arg10[%c0_18, %c0_19, %c0_20] : memref<8x24x4xf32, #tpu.memory_space<vmem>>, vector<6x24x4xf32>
    %22 = vector.shape_cast %21 : vector<6x24x4xf32> to vector<144x4xf32>
    %c0_21 = arith.constant 0 : index
    %c0_22 = arith.constant 0 : index
    %c0_23 = arith.constant 0 : index
    %23 = vector.load %arg5[%c0_21, %c0_22, %c0_23] : memref<3x4x384xf32, #tpu.memory_space<vmem>>, vector<1x4x384xf32>
    %24 = vector.shape_cast %23 : vector<1x4x384xf32> to vector<4x384xf32>
    %cst_24 = arith.constant dense<0.000000e+00> : vector<144x384xf32>
    %25 = tpu.matmul %22, %24, %cst_24 {dimension_numbers = #tpu.dot_dimension_numbers<[1], [0], [0], [1], [0, 0, 1, 1], [], []>} : vector<144x4xf32>, vector<4x384xf32>, vector<144x384xf32> -> vector<144x384xf32>
    %c1_25 = arith.constant 1 : index
    %c0_26 = arith.constant 0 : index
    %c0_27 = arith.constant 0 : index
    %26 = vector.load %arg10[%c1_25, %c0_26, %c0_27] : memref<8x24x4xf32, #tpu.memory_space<vmem>>, vector<6x24x4xf32>
    %27 = vector.shape_cast %26 : vector<6x24x4xf32> to vector<144x4xf32>
    %c1_28 = arith.constant 1 : index
    %c0_29 = arith.constant 0 : index
    %c0_30 = arith.constant 0 : index
    %28 = vector.load %arg5[%c1_28, %c0_29, %c0_30] : memref<3x4x384xf32, #tpu.memory_space<vmem>>, vector<1x4x384xf32>
    %29 = vector.shape_cast %28 : vector<1x4x384xf32> to vector<4x384xf32>
    %cst_31 = arith.constant dense<0.000000e+00> : vector<144x384xf32>
    %30 = tpu.matmul %27, %29, %cst_31 {dimension_numbers = #tpu.dot_dimension_numbers<[1], [0], [0], [1], [0, 0, 1, 1], [], []>} : vector<144x4xf32>, vector<4x384xf32>, vector<144x384xf32> -> vector<144x384xf32>
    %31 = arith.addf %25, %30 : vector<144x384xf32>
    %c2_32 = arith.constant 2 : index
    %c0_33 = arith.constant 0 : index
    %c0_34 = arith.constant 0 : index
    %32 = vector.load %arg10[%c2_32, %c0_33, %c0_34] : memref<8x24x4xf32, #tpu.memory_space<vmem>>, vector<6x24x4xf32>
    %33 = vector.shape_cast %32 : vector<6x24x4xf32> to vector<144x4xf32>
    %c2_35 = arith.constant 2 : index
    %c0_36 = arith.constant 0 : index
    %c0_37 = arith.constant 0 : index
    %34 = vector.load %arg5[%c2_35, %c0_36, %c0_37] : memref<3x4x384xf32, #tpu.memory_space<vmem>>, vector<1x4x384xf32>
    %35 = vector.shape_cast %34 : vector<1x4x384xf32> to vector<4x384xf32>
    %cst_38 = arith.constant dense<0.000000e+00> : vector<144x384xf32>
    %36 = tpu.matmul %33, %35, %cst_38 {dimension_numbers = #tpu.dot_dimension_numbers<[1], [0], [0], [1], [0, 0, 1, 1], [], []>} : vector<144x4xf32>, vector<4x384xf32>, vector<144x384xf32> -> vector<144x384xf32>
    %37 = arith.addf %31, %36 : vector<144x384xf32>
    %38 = vector.shape_cast %37 : vector<144x384xf32> to vector<6x24x384xf32>
    %39 = vector.extract_strided_slice %38 {offsets = [0, 0, 0], sizes = [6, 16, 128], strides = [1, 1, 1]} : vector<6x24x384xf32> to vector<6x16x128xf32>
    %40 = vector.extract_strided_slice %38 {offsets = [0, 1, 128], sizes = [6, 16, 128], strides = [1, 1, 1]} : vector<6x24x384xf32> to vector<6x16x128xf32>
    %41 = arith.addf %39, %40 : vector<6x16x128xf32>
    %42 = vector.extract_strided_slice %38 {offsets = [0, 2, 256], sizes = [6, 16, 128], strides = [1, 1, 1]} : vector<6x24x384xf32> to vector<6x16x128xf32>
    %43 = arith.addf %41, %42 : vector<6x16x128xf32>
    %44 = vector.shape_cast %20 : vector<128xf32> to vector<1x1x128xf32>
    %45 = vector.broadcast %44 : vector<1x1x128xf32> to vector<6x16x128xf32>
    %46 = arith.addf %45, %43 : vector<6x16x128xf32>
    %cst_39 = arith.constant 0.000000e+00 : f32
    %47 = vector.broadcast %cst_39 : f32 to vector<6x16x128xf32>
    %48 = arith.cmpf oge, %46, %47 : vector<6x16x128xf32>
    %cst_40 = arith.constant 1.250000e-01 : f32
    %49 = vector.broadcast %cst_40 : f32 to vector<6x16x128xf32>
    %50 = arith.mulf %49, %46 : vector<6x16x128xf32>
    %51 = arith.select %48, %46, %50 : vector<6x16x128xi1>, vector<6x16x128xf32>
    %cst_41 = arith.constant 0.000000e+00 : f32
    %52 = vector.broadcast %cst_41 : f32 to vector<6x1x128xf32>
    %c0_42 = arith.constant 0 : index
    %c0_43 = arith.constant 0 : index
    %c0_44 = arith.constant 0 : index
    %53 = vector.load %arg11[%c0_42, %c0_43, %c0_44] : memref<6x24x128xf32, #tpu.memory_space<vmem>>, vector<6x1x128xf32>
    tpu.vector_store %arg11[%c0_42, %c0_43, %c0_44], %52 {strides = array<i32>} : memref<6x24x128xf32, #tpu.memory_space<vmem>>, vector<6x1x128xf32>,
    %cst_45 = arith.constant 0.000000e+00 : f32
    %54 = vector.broadcast %cst_45 : f32 to vector<6x1x128xf32>
    %c0_46 = arith.constant 0 : index
    %c17_47 = arith.constant 17 : index
    %c0_48 = arith.constant 0 : index
    %55 = vector.load %arg11[%c0_46, %c17_47, %c0_48] : memref<6x24x128xf32, #tpu.memory_space<vmem>>, vector<6x1x128xf32>
    tpu.vector_store %arg11[%c0_46, %c17_47, %c0_48], %54 {strides = array<i32>} : memref<6x24x128xf32, #tpu.memory_space<vmem>>, vector<6x1x128xf32>,
    %c0_49 = arith.constant 0 : index
    %c1_50 = arith.constant 1 : index
    %c0_51 = arith.constant 0 : index
    %56 = vector.load %arg11[%c0_49, %c1_50, %c0_51] : memref<6x24x128xf32, #tpu.memory_space<vmem>>, vector<6x16x128xf32>
    tpu.vector_store %arg11[%c0_49, %c1_50, %c0_51], %51 {strides = array<i32>} : memref<6x24x128xf32, #tpu.memory_space<vmem>>, vector<6x16x128xf32>,
    %c0_i32_52 = arith.constant 0 : i32
    %57 = arith.cmpi eq, %arg1, %c0_i32_52 : i32
    %58 = arith.extui %57 : i1 to i32
    %c0_i32_53 = arith.constant 0 : i32
    %59 = arith.cmpi ne, %58, %c0_i32_53 : i32
    scf.if %59 {
      %cst_85 = arith.constant 0.000000e+00 : f32
      %99 = vector.broadcast %cst_85 : f32 to vector<1x16x128xf32>
      %c0_86 = arith.constant 0 : index
      %c1_87 = arith.constant 1 : index
      %c0_88 = arith.constant 0 : index
      %100 = vector.load %arg11[%c0_86, %c1_87, %c0_88] : memref<6x24x128xf32, #tpu.memory_space<vmem>>, vector<1x16x128xf32>
      tpu.vector_store %arg11[%c0_86, %c1_87, %c0_88], %99 {strides = array<i32>} : memref<6x24x128xf32, #tpu.memory_space<vmem>>, vector<1x16x128xf32>,
    } else {
    }
    %c3_i32_54 = arith.constant 3 : i32
    %60 = arith.cmpi eq, %arg1, %c3_i32_54 : i32
    %61 = arith.extui %60 : i1 to i32
    %c0_i32_55 = arith.constant 0 : i32
    %62 = arith.cmpi ne, %61, %c0_i32_55 : i32
    scf.if %62 {
      %cst_85 = arith.constant 0.000000e+00 : f32
      %99 = vector.broadcast %cst_85 : f32 to vector<1x16x128xf32>
      %c5 = arith.constant 5 : index
      %c1_86 = arith.constant 1 : index
      %c0_87 = arith.constant 0 : index
      %100 = vector.load %arg11[%c5, %c1_86, %c0_87] : memref<6x24x128xf32, #tpu.memory_space<vmem>>, vector<1x16x128xf32>
      tpu.vector_store %arg11[%c5, %c1_86, %c0_87], %99 {strides = array<i32>} : memref<6x24x128xf32, #tpu.memory_space<vmem>>, vector<1x16x128xf32>,
    } else {
    }
    %c0_56 = arith.constant 0 : index
    %c0_57 = arith.constant 0 : index
    %63 = vector.load %arg8[%c0_56, %c0_57] : memref<1x128xf32, #tpu.memory_space<vmem>>, vector<1x128xf32>
    %64 = vector.shape_cast %63 : vector<1x128xf32> to vector<128xf32>
    %c0_58 = arith.constant 0 : index
    %c0_59 = arith.constant 0 : index
    %c0_60 = arith.constant 0 : index
    %65 = vector.load %arg11[%c0_58, %c0_59, %c0_60] : memref<6x24x128xf32, #tpu.memory_space<vmem>>, vector<4x24x128xf32>
    %66 = vector.shape_cast %65 : vector<4x24x128xf32> to vector<96x128xf32>
    %c0_61 = arith.constant 0 : index
    %c0_62 = arith.constant 0 : index
    %c0_63 = arith.constant 0 : index
    %67 = vector.load %arg7[%c0_61, %c0_62, %c0_63] : memref<3x128x384xf32, #tpu.memory_space<vmem>>, vector<1x128x384xf32>
    %68 = vector.shape_cast %67 : vector<1x128x384xf32> to vector<128x384xf32>
    %cst_64 = arith.constant dense<0.000000e+00> : vector<96x384xf32>
    %69 = tpu.matmul %66, %68, %cst_64 {dimension_numbers = #tpu.dot_dimension_numbers<[1], [0], [0], [1], [0, 0, 1, 1], [], []>} : vector<96x128xf32>, vector<128x384xf32>, vector<96x384xf32> -> vector<96x384xf32>
    %c1_65 = arith.constant 1 : index
    %c0_66 = arith.constant 0 : index
    %c0_67 = arith.constant 0 : index
    %70 = vector.load %arg11[%c1_65, %c0_66, %c0_67] : memref<6x24x128xf32, #tpu.memory_space<vmem>>, vector<4x24x128xf32>
    %71 = vector.shape_cast %70 : vector<4x24x128xf32> to vector<96x128xf32>
    %c1_68 = arith.constant 1 : index
    %c0_69 = arith.constant 0 : index
    %c0_70 = arith.constant 0 : index
    %72 = vector.load %arg7[%c1_68, %c0_69, %c0_70] : memref<3x128x384xf32, #tpu.memory_space<vmem>>, vector<1x128x384xf32>
    %73 = vector.shape_cast %72 : vector<1x128x384xf32> to vector<128x384xf32>
    %cst_71 = arith.constant dense<0.000000e+00> : vector<96x384xf32>
    %74 = tpu.matmul %71, %73, %cst_71 {dimension_numbers = #tpu.dot_dimension_numbers<[1], [0], [0], [1], [0, 0, 1, 1], [], []>} : vector<96x128xf32>, vector<128x384xf32>, vector<96x384xf32> -> vector<96x384xf32>
    %75 = arith.addf %69, %74 : vector<96x384xf32>
    %c2_72 = arith.constant 2 : index
    %c0_73 = arith.constant 0 : index
    %c0_74 = arith.constant 0 : index
    %76 = vector.load %arg11[%c2_72, %c0_73, %c0_74] : memref<6x24x128xf32, #tpu.memory_space<vmem>>, vector<4x24x128xf32>
    %77 = vector.shape_cast %76 : vector<4x24x128xf32> to vector<96x128xf32>
    %c2_75 = arith.constant 2 : index
    %c0_76 = arith.constant 0 : index
    %c0_77 = arith.constant 0 : index
    %78 = vector.load %arg7[%c2_75, %c0_76, %c0_77] : memref<3x128x384xf32, #tpu.memory_space<vmem>>, vector<1x128x384xf32>
    %79 = vector.shape_cast %78 : vector<1x128x384xf32> to vector<128x384xf32>
    %cst_78 = arith.constant dense<0.000000e+00> : vector<96x384xf32>
    %80 = tpu.matmul %77, %79, %cst_78 {dimension_numbers = #tpu.dot_dimension_numbers<[1], [0], [0], [1], [0, 0, 1, 1], [], []>} : vector<96x128xf32>, vector<128x384xf32>, vector<96x384xf32> -> vector<96x384xf32>
    %81 = arith.addf %75, %80 : vector<96x384xf32>
    %82 = vector.shape_cast %81 : vector<96x384xf32> to vector<4x24x384xf32>
    %83 = vector.extract_strided_slice %82 {offsets = [0, 0, 0], sizes = [4, 16, 128], strides = [1, 1, 1]} : vector<4x24x384xf32> to vector<4x16x128xf32>
    %84 = vector.extract_strided_slice %82 {offsets = [0, 1, 128], sizes = [4, 16, 128], strides = [1, 1, 1]} : vector<4x24x384xf32> to vector<4x16x128xf32>
    %85 = arith.addf %83, %84 : vector<4x16x128xf32>
    %86 = vector.extract_strided_slice %82 {offsets = [0, 2, 256], sizes = [4, 16, 128], strides = [1, 1, 1]} : vector<4x24x384xf32> to vector<4x16x128xf32>
    %87 = arith.addf %85, %86 : vector<4x16x128xf32>
    %88 = vector.shape_cast %64 : vector<128xf32> to vector<1x1x128xf32>
    %89 = vector.broadcast %88 : vector<1x1x128xf32> to vector<4x16x128xf32>
    %90 = arith.addf %89, %87 : vector<4x16x128xf32>
    %cst_79 = arith.constant 0.000000e+00 : f32
    %91 = vector.broadcast %cst_79 : f32 to vector<4x16x128xf32>
    %92 = arith.cmpf oge, %90, %91 : vector<4x16x128xf32>
    %cst_80 = arith.constant 1.250000e-01 : f32
    %93 = vector.broadcast %cst_80 : f32 to vector<4x16x128xf32>
    %94 = arith.mulf %93, %90 : vector<4x16x128xf32>
    %95 = arith.select %92, %90, %94 : vector<4x16x128xi1>, vector<4x16x128xf32>
    %c0_81 = arith.constant 0 : index
    %c0_82 = arith.constant 0 : index
    %c0_83 = arith.constant 0 : index
    %c0_84 = arith.constant 0 : index
    %96 = vector.load %arg9[%c0_81, %c0_82, %c0_83, %c0_84] : memref<1x4x16x128xf32, #tpu.memory_space<vmem>>, vector<1x4x16x128xf32>
    %97 = vector.shape_cast %96 : vector<1x4x16x128xf32> to vector<4x16x128xf32>
    %98 = vector.shape_cast %95 : vector<4x16x128xf32> to vector<1x4x16x128xf32>
    tpu.vector_store %arg9[%c0_81, %c0_82, %c0_83, %c0_84], %98 {strides = array<i32>} : memref<1x4x16x128xf32, #tpu.memory_space<vmem>>, vector<1x4x16x128xf32>,
    return
  }
  func.func @transform_0(%arg0: i32, %arg1: i32) -> (i32, i32, i32, i32) {
    %c0_i32 = arith.constant 0 : i32
    %c0_i32_0 = arith.constant 0 : i32
    %c0_i32_1 = arith.constant 0 : i32
    return %arg0, %arg1, %c0_i32, %c0_i32_0 : i32, i32, i32, i32
  }
  func.func @transform_1(%arg0: i32, %arg1: i32) -> (i32, i32, i32, i32) {
    %c2_i32 = arith.constant 2 : i32
    %0 = arith.muli %arg1, %c2_i32 : i32
    %c1_i32 = arith.constant 1 : i32
    %1 = arith.subi %0, %c1_i32 : i32
    %c0_i32 = arith.constant 0 : i32
    %2 = arith.maxsi %1, %c0_i32 : i32
    %c0_i32_0 = arith.constant 0 : i32
    %c0_i32_1 = arith.constant 0 : i32
    %c0_i32_2 = arith.constant 0 : i32
    return %arg0, %2, %c0_i32_0, %c0_i32_1 : i32, i32, i32, i32
  }
  func.func @transform_2(%arg0: i32, %arg1: i32) -> (i32, i32, i32, i32) {
    %c1_i32 = arith.constant 1 : i32
    %0 = arith.addi %arg1, %c1_i32 : i32
    %c2_i32 = arith.constant 2 : i32
    %1 = arith.muli %0, %c2_i32 : i32
    %c7_i32 = arith.constant 7 : i32
    %2 = arith.minsi %1, %c7_i32 : i32
    %c0_i32 = arith.constant 0 : i32
    %c0_i32_0 = arith.constant 0 : i32
    %c0_i32_1 = arith.constant 0 : i32
    return %arg0, %2, %c0_i32, %c0_i32_0 : i32, i32, i32, i32
  }
  func.func @transform_3(%arg0: i32, %arg1: i32) -> (i32, i32, i32) {
    %c0_i32 = arith.constant 0 : i32
    %c0_i32_0 = arith.constant 0 : i32
    %c0_i32_1 = arith.constant 0 : i32
    %c0_i32_2 = arith.constant 0 : i32
    return %c0_i32, %c0_i32_0, %c0_i32_1 : i32, i32, i32
  }
  func.func @transform_4(%arg0: i32, %arg1: i32) -> (i32, i32) {
    %c0_i32 = arith.constant 0 : i32
    %c0_i32_0 = arith.constant 0 : i32
    %c0_i32_1 = arith.constant 0 : i32
    return %c0_i32, %c0_i32_0 : i32, i32
  }
  func.func @transform_5(%arg0: i32, %arg1: i32) -> (i32, i32, i32) {
    %c0_i32 = arith.constant 0 : i32
    %c0_i32_0 = arith.constant 0 : i32
    %c0_i32_1 = arith.constant 0 : i32
    %c0_i32_2 = arith.constant 0 : i32
    return %c0_i32, %c0_i32_0, %c0_i32_1 : i32, i32, i32
  }
  func.func @transform_6(%arg0: i32, %arg1: i32) -> (i32, i32) {
    %c0_i32 = arith.constant 0 : i32
    %c0_i32_0 = arith.constant 0 : i32
    %c0_i32_1 = arith.constant 0 : i32
    return %c0_i32, %c0_i32_0 : i32, i32
  }
  func.func @transform_7(%arg0: i32, %arg1: i32) -> (i32, i32, i32, i32) {
    %c0_i32 = arith.constant 0 : i32
    %c0_i32_0 = arith.constant 0 : i32
    %c0_i32_1 = arith.constant 0 : i32
    return %arg0, %arg1, %c0_i32, %c0_i32_0 : i32, i32, i32, i32
  }
}

</mosaic_0001>

<bundles_post_ra>
// kernel: _lambda_.1
= control target key start
LH: loop header
LB: loop body
LE: loop exit
PB: predicated region body
PF: predicated region fallthrough
CT: control target
= control target key end

     0   :  { %12 = vsyncpa [#allocation5], 0  ;;  %s4436_s24 = smov 0   ;;  %s4438_s25 = smov 0   ;;  %s5248_s0 = inlined_call_operand.vmem [shape: f32[2,16,16,4], index: 0, kind: input, shape index: {}, may-alias: {0,1,2}]   ;;  %s5249_s1 = inlined_call_operand.vmem [shape: f32[2,16,16,4], index: 1, kind: input, shape index: {}, may-alias: {0,1,2}]   ;;  %s5250_s2 = inlined_call_operand.vmem [shape: f32[2,16,16,4], index: 2, kind: input, shape index: {}, may-alias: {0,1,2}]   ;;  %s5251_s3 = inlined_call_operand.vmem [shape: f32[3,4,384], index: 3, kind: input, shape index: {}]   ;;  %s5252_s4 = inlined_call_operand.vmem [shape: f32[1,128], index: 4, kind: input, shape index: {}]   ;;  %s5253_s5 = inlined_call_operand.hbm [shape: f32[3,128,384], index: 5, kind: input, shape index: {}]   ;;  %s5254_s6 = inlined_call_operand.vmem [shape: f32[1,128], index: 6, kind: input, shape index: {}]   ;;  %s5255_s7 = inlined_call_operand.vmem [shape: f32[2,16,16,128], index: 7, kind: output, shape index: {}]  }
   0x1   :  { %s4440_s26 = smov 0   ;;  %s4442_s27 = smov 0  }
   0x2   :  { %s4444_s28 = smov 0  }
   0x3 LB: > { %s3338_s29 = sadd.s32 4294967295, %s4386_s28   ;;  %s27_s30 = sadd.s32 1, %s4378_s26  ;;  %s4386_s28 = sphi %s4444_s28, %s18_s28   ;;  %s4382_s27 = sphi %s4442_s27, %s5267_s27   ;;  %s4378_s26 = sphi %s4440_s26, %s5266_s26   ;;  %s4374_s25 = sphi %s4438_s25, %s5265_s25   ;;  %s4370_s24 = sphi %s4436_s24, %s5264_s24  }
   0x4   : > { %p28_p0 = scmp.ge.s32.totalorder %s27_s30, 4  ;;  %s30_s8 = sadd.s32 1, %s4382_s27 }
   0x5   : > { %p3346_p1 = scmp.ge.s32.totalorder %s4386_s28, 1  ;;  %p247_p2 = scmp.lt.s32.totalorder %s4386_s28, 9 }
   0x6   : > { %s5269_s30 = smov (%p28_p0, %s27_s30), 0  ;;  %s5271_s8 = smov (!%p28_p0, %s30_s8), %s4382_s27 }
   0x7   : > { %p4469_p3 = pnand %p3346_p1, %p247_p2  ;;  %p32_p4 = scmp.ge.s32.totalorder %s5271_s8, 2 }
   0x8   : > { %p4473_p5 = scmp.eq.s32.totalorder %s3338_s29, 0  ;;  %s4388_s11 = smov [#allocation4]  }
   0x9   : > { %s5259_s9 = scalar_select %p4469_p3, 1, 0 }
   0xa   : > { %s5260_s10 = scalar_select %p4473_p5, 1, 0 }
   0xb   : > { %p4259_p6 = pneg %p4469_p3  ;;  %s5273_s8 = smov (%p32_p4, %s5271_s8), 0 }
   0xc   : > { %s265_s12 = sshll.u32 %s4388_s11, 4  ;;  %s4316_s16 = scalar_lea.hbm %s5253_s5, 18432  ;;  %s266_s12 = int_to_ptr.vmem [resolvable:$true] %s265_s12 }
   0xd   : > { %p4483_p7 = pnand %p4473_p5, %p4259_p6  ;;  %p4317_p8 = scmp.ne.s32.totalorder %s5253_s5, %s4316_s16 }
   0xe   : > { %p4323_p12 = scmp.lt.u32.totalorder %s4316_s16, %s5253_s5 }
   0xf   : > { %p4318_p9 = pneg %p4483_p7 }
  0x11   : > { %p4319_p10 = pnand %p4318_p9, %p4317_p8 }
  0x13   : > { %p4320_p11 = pneg %p4319_p10 }
  0x15   : > { %p4325_p13 = pnand %p4323_p12, %p4320_p11 }
  0x17   : > { %4328 = shalt.err (!%p4325_p13)
}
  0x18   : > { %s4329_s21 = scalar_lea.vmem %s266_s12, 18432  ;;  %p4337_p4 = scmp.lt.s32.totalorder %s266_s12, %s266_s12 }
  0x19   : > { %p4330_p0 = scmp.ne.s32.totalorder %s266_s12, %s4329_s21  ;;  %p4338_p6 = scmp.lt.s32.totalorder %s4329_s21, %s4329_s21 }
  0x1b   : > { %p4332_p1 = pnand %p4330_p0, %p4318_p9  ;;  %p4339_p5 = por %p4338_p6, %p4337_p4 }
  0x1d   : > { %p4333_p2 = pneg %p4332_p1 }
  0x1f   : > { %p4340_p3 = pnand %p4339_p5, %p4333_p2 }
  0x21   : > { %4343 = shalt.err (!%p4340_p3)
}
  0x22   : > { %s4389_s22 = smov 384   ;;  %s4390_s23 = smov 24  }
  0x23   : > { %4262 = dma.hbm_to_vmem [thread:$0]  (!%p4483_p7), %s5253_s5, 18432, %s266_s12, [#allocation5], %s4389_s22, %s4389_s22, %s4390_s23  }
  0x24   : > { %p5262_p8 = scmp.ne.s32.totalorder %s5259_s9, 0 }
  0x25   : > { %p5263_p10 = scmp.ne.s32.totalorder (!%p5262_p8), %s5260_s10, 0 }
  0x26   : > { %342 = sbr.rel (%p5262_p8) target bundleno = 998 (0x3e6), region = 48 }
  0x2d   : > { %4365 = dma.done.wait (%p5263_p10), [#allocation5], 18432  }
  0x2e   : > { %4367 = vsyncadd (%p5263_p10), [#allocation5], 4294948864  ;;  %vm472_vm0 = vcmask 24576   ;;  %s3351_s14 = sshll.u32 %s4370_s24, 2  ;;  %p413_p3 = scmp.lt.s32.totalorder %s4374_s25, 1  ;;  %v4391_v0 = vmov 0.0  }
  0x2f   : > { %473 = vst.msk [vmem:[#allocation2] sm:$0x1] %vm472_vm0, %v4391_v0  ;;  %474 = vst.msk [vmem:[#allocation2 + $0x18] sm:$0x1] %vm472_vm0, %v4391_v0  ;;  %p415_p5 = scmp.lt.s32.totalorder %s3351_s14, 15  ;;  %s3355_s9 = sshll.u32 %s4370_s24, 1 }
  0x30   : > { %475 = vst.msk [vmem:[#allocation2 + $0x30] sm:$0x1] %vm472_vm0, %v4391_v0  ;;  %476 = vst.msk [vmem:[#allocation2 + $0x48] sm:$0x1] %vm472_vm0, %v4391_v0  ;;  %s5275_s25 = smov (!%p413_p3, %s4374_s25), 1  ;;  %s3356_s12 = sadd.s32 4294967295, %s3355_s9 }
  0x31   : > { %477 = vst.msk [vmem:[#allocation2 + $0x60] sm:$0x1] %vm472_vm0, %v4391_v0  ;;  %478 = vst.msk [vmem:[#allocation2 + $0x78] sm:$0x1] %vm472_vm0, %v4391_v0  ;;  %s5277_s14 = smov (!%p415_p5, %s3351_s14), 15  ;;  %s4547_s10 = sshll.u32 %s5275_s25, 5 }
  0x32   : > { %479 = vst.msk [vmem:[#allocation2 + $0x90] sm:$0x1] %vm472_vm0, %v4391_v0  ;;  %480 = vst.msk [vmem:[#allocation2 + $0xa8] sm:$0x1] %vm472_vm0, %v4391_v0  ;;  %s3352_s13 = sshll.u32 %s5277_s14, 1  ;;  %p425_p7 = scmp.gt.s32.totalorder %s3356_s12, 0 }
  0x33   : > { %481 = vst.msk [vmem:[#allocation2 + $0x11] sm:$0x1] %vm472_vm0, %v4391_v0  ;;  %482 = vst.msk [vmem:[#allocation2 + $0x29] sm:$0x1] %vm472_vm0, %v4391_v0  ;;  %s419_s15 = sadd.s32 %s4547_s10, %s3352_s13  ;;  %s3506_s16 = sadd.s32 2, %s3355_s9  ;;  %vm498_vm1 = vcmask 31744  }
  0x34   : > { %483 = vst.msk [vmem:[#allocation2 + $0x41] sm:$0x1] %vm472_vm0, %v4391_v0  ;;  %484 = vst.msk [vmem:[#allocation2 + $0x59] sm:$0x1] %vm472_vm0, %v4391_v0  ;;  %s3354_s17 = sshll.u32 %s419_s15, 3  ;;  %p444_p9 = scmp.lt.s32.totalorder %s3506_s16, 7 }
  0x35   : > { %485 = vst.msk [vmem:[#allocation2 + $0x71] sm:$0x1] %vm472_vm0, %v4391_v0  ;;  %486 = vst.msk [vmem:[#allocation2 + $0x89] sm:$0x1] %vm472_vm0, %v4391_v0  ;;  %s421_s20 = scalar_lea.vmem %s5248_s0, %s3354_s17  ;;  %s4556_s23 = scalar_lea.vmem %s5255_s7, %s3354_s17 }
  0x36   : > { %487 = vst.msk [vmem:[#allocation2 + $0xa1] sm:$0x1] %vm472_vm0, %v4391_v0  ;;  %488 = vst.msk [vmem:[#allocation2 + $0xb9] sm:$0x1] %vm472_vm0, %v4391_v0  ;;  %s5279_s12 = smov (!%p425_p7, %s3356_s12), 0  ;;  %v489_v1 = vld [vmem:[%s421_s20] sm:$0xff] }
  0x37   : > { %v490_v2 = vld [vmem:[%s421_s20 + $0x8] sm:$0xff]  ;;  %v491_v3 = vld [vmem:[%s421_s20 + $0x10] sm:$0xff]  ;;  %s5281_s16 = smov (!%p444_p9, %s3506_s16), 7  ;;  %499 = vst.msk [vmem:[#allocation2 + $0x31] sm:$0xff] %vm498_vm1, %v489_v1  ;;  %v492_v4 = vld [vmem:[%s421_s20 + $0x18] sm:$0xff]  ;;  %s3357_s25 = sshll.u32 %s5279_s12, 1 }
  0x38   : > { %500 = vst.msk [vmem:[#allocation2 + $0x39] sm:$0xff] %vm498_vm1, %v490_v2  ;;  %501 = vst.msk [vmem:[#allocation2 + $0x49] sm:$0xff] %vm498_vm1, %v491_v3  ;;  %v493_v5 = vld [vmem:[%s421_s20 + $0x20] sm:$0xff]  ;;  %v494_v6 = vld [vmem:[%s421_s20 + $0x28] sm:$0xff]  ;;  %p430_p11 = scmp.lt.s32.totalorder %s3357_s25, 15  ;;  %s3362_s29 = sshll.u32 %s5281_s16, 1 }
  0x39   : > { %502 = vst.msk [vmem:[#allocation2 + $0x51] sm:$0xff] %vm498_vm1, %v492_v4  ;;  %503 = vst.msk [vmem:[#allocation2 + $0x61] sm:$0xff] %vm498_vm1, %v493_v5  ;;  %v495_v7 = vld [vmem:[%s421_s20 + $0x30] sm:$0xff]  ;;  %v496_v8 = vld [vmem:[%s421_s20 + $0x38] sm:$0xff]  ;;  %p449_p12 = scmp.lt.s32.totalorder %s3362_s29, 15  ;;  %p3370_p13 = scmp.le.s32.totalorder %s4370_s24, 0 }
  0x3a   : > { %504 = vst.msk [vmem:[#allocation2 + $0x69] sm:$0xff] %vm498_vm1, %v494_v6  ;;  %505 = vst.msk [vmem:[#allocation2 + $0x79] sm:$0xff] %vm498_vm1, %v495_v7  ;;  %s5283_s25 = smov (!%p430_p11, %s3357_s25), 15 }
  0x3b   : > { %506 = vst.msk [vmem:[#allocation2 + $0x81] sm:$0xff] %vm498_vm1, %v496_v8  ;;  %s5285_s29 = smov (!%p449_p12, %s3362_s29), 15  ;;  %s3358_s11 = sshll.u32 %s5283_s25, 1 }
  0x3c   : > { %s434_s14 = sadd.s32 %s3358_s11, %s4547_s10  ;;  %s3363_s9 = sshll.u32 %s5285_s29, 1 }
  0x3d   : > { %s3360_s12 = sshll.u32 %s434_s14, 3  ;;  %s453_s13 = sadd.s32 %s3363_s9, %s4547_s10 }
  0x3e   : > { %s436_s18 = scalar_lea.vmem %s5249_s1, %s3360_s12  ;;  %s3365_s19 = sshll.u32 %s453_s13, 3 }
  0x3f   : > { %s455_s16 = scalar_lea.vmem %s5250_s2, %s3365_s19  ;;  %510 = sbr.rel (%p3370_p13) target bundleno = 70 (0x46), region = 56  ;;  %v511_v9 = vld [vmem:[%s436_s18] sm:$0xff] (!%p3370_p13)  ;;  %v512_v10 = vld [vmem:[%s436_s18 + $0x8] sm:$0xff] (!%p3370_p13)  ;;  %v513_v11 = vld [vmem:[%s436_s18 + $0x10] sm:$0xff] (!%p3370_p13) }
  0x40   : > { %515 = vst.msk [vmem:[#allocation2 + $0x1] sm:$0xff] (!%p3370_p13), %vm498_vm1, %v511_v9  ;;  %516 = vst.msk [vmem:[#allocation2 + $0x9] sm:$0xff] (!%p3370_p13), %vm498_vm1, %v512_v10  ;;  %v514_v12 = vld [vmem:[%s436_s18 + $0x18] sm:$0xff] (!%p3370_p13) }
  0x41   : > { %517 = vst.msk [vmem:[#allocation2 + $0x19] sm:$0xff] (!%p3370_p13), %vm498_vm1, %v513_v11  ;;  %518 = vst.msk [vmem:[#allocation2 + $0x21] sm:$0xff] (!%p3370_p13), %vm498_vm1, %v514_v12 }
  0x46 PF: > { %p3371_p0 = scmp.ne.s32.totalorder %s4370_s24, 0 }
  0x47   : > { %v4392_v13 = vmov (!%p3371_p0), 0.0  }
  0x48   : > { %522 = sbr.rel (%p3371_p0) target bundleno = 79 (0x4f), region = 60  ;;  %523 = vst.msk [vmem:[#allocation2 + $0x1] sm:$0xff] (!%p3371_p0), %vm498_vm1, %v4392_v13  ;;  %524 = vst.msk [vmem:[#allocation2 + $0x9] sm:$0xff] (!%p3371_p0), %vm498_vm1, %v4392_v13 }
  0x49   : > { %525 = vst.msk [vmem:[#allocation2 + $0x19] sm:$0xff] (!%p3371_p0), %vm498_vm1, %v4392_v13  ;;  %526 = vst.msk [vmem:[#allocation2 + $0x21] sm:$0xff] (!%p3371_p0), %vm498_vm1, %v4392_v13 }
  0x4f PF: > { %p3372_p1 = scmp.ge.s32.totalorder %s4370_s24, 3 }
  0x50   : > { %v531_v14 = vld [vmem:[%s455_s16] sm:$0xff] (!%p3372_p1)  ;;  %v532_v15 = vld [vmem:[%s455_s16 + $0x8] sm:$0xff] (!%p3372_p1)  ;;  %v533_v16 = vld [vmem:[%s455_s16 + $0x10] sm:$0xff] (!%p3372_p1) }
  0x51   : > { %530 = sbr.rel (%p3372_p1) target bundleno = 88 (0x58), region = 64  ;;  %536 = vst.msk [vmem:[#allocation2 + $0x91] sm:$0xff] (!%p3372_p1), %vm498_vm1, %v531_v14  ;;  %537 = vst.msk [vmem:[#allocation2 + $0x99] sm:$0xff] (!%p3372_p1), %vm498_vm1, %v532_v15  ;;  %v534_v17 = vld [vmem:[%s455_s16 + $0x18] sm:$0xff] (!%p3372_p1) }
  0x52   : > { %538 = vst.msk [vmem:[#allocation2 + $0xa9] sm:$0xff] (!%p3372_p1), %vm498_vm1, %v533_v16  ;;  %539 = vst.msk [vmem:[#allocation2 + $0xb1] sm:$0xff] (!%p3372_p1), %vm498_vm1, %v534_v17 }
  0x58 PF: > { %p3373_p2 = scmp.ne.s32.totalorder %s4370_s24, 3 }
  0x59   : > { %v4393_v18 = vmov (!%p3373_p2), 0.0  }
  0x5a   : > { %543 = sbr.rel (%p3373_p2) target bundleno = 97 (0x61), region = 68  ;;  %545 = vst.msk [vmem:[#allocation2 + $0x91] sm:$0xff] (!%p3373_p2), %vm498_vm1, %v4393_v18  ;;  %546 = vst.msk [vmem:[#allocation2 + $0x99] sm:$0xff] (!%p3373_p2), %vm498_vm1, %v4393_v18 }
  0x5b   : > { %547 = vst.msk [vmem:[#allocation2 + $0xa9] sm:$0xff] (!%p3373_p2), %vm498_vm1, %v4393_v18  ;;  %548 = vst.msk [vmem:[#allocation2 + $0xb1] sm:$0xff] (!%p3373_p2), %vm498_vm1, %v4393_v18 }
  0x61 PF: > { %v3374_v19 = vld [vmem:[%s5251_s3 + $0xc] sm:$0xff]  ;;  %vm649_vm2 = vcmask 1043456   ;;  %720 = vmatprep.mubr.f32.mxu0 %v4391_v0  ;;  %v3375_v20 = vld [vmem:[%s5251_s3 + $0x14] sm:$0xf]  ;;  %2017 = vst [vmem:[#allocation3] sm:$0x1] %v4391_v0 }
  0x62   : > { %2018 = vst [vmem:[#allocation3 + $0x18] sm:$0x1] %v4391_v0  ;;  %2019 = vst [vmem:[#allocation3 + $0x30] sm:$0x1] %v4391_v0  ;;  %v594_v21 = vcombine.high %v3374_v19, %v3374_v19  ;;  %4077 = vmatprep.subr.msk.mxu1 %vm649_vm2, %v3375_v20  ;;  %v4618_v22 = vld [vmem:[#allocation2 + $0x48] sm:$0xff]  ;;  %v4620_v23 = vld [vmem:[#allocation2 + $0x18] sm:$0xff] }
  0x63   : > { %2020 = vst [vmem:[#allocation3 + $0x48] sm:$0x1] %v4391_v0  ;;  %2021 = vst [vmem:[#allocation3 + $0x60] sm:$0x1] %v4391_v0  ;;  %4078 = vmatpush3.msk.msra.mxu1 %vm649_vm2, %v3375_v20  ;;  %3659 = vmatprep.mubr.msk.f32.mxu1 %vm498_vm1, %v4618_v22  ;;  %v4625_v24 = vld [vmem:[#allocation2 + $0x50] sm:$0xff]  ;;  %v4627_v25 = vld [vmem:[#allocation2 + $0x58] sm:$0xff] }
  0x64   : > { %2022 = vst [vmem:[#allocation3 + $0x78] sm:$0x1] %v4391_v0  ;;  %2023 = vst [vmem:[#allocation3 + $0x11] sm:$0x1] %v4391_v0  ;;  %3376 = vmatprep.subr.msk.mxu0 %vm649_vm2, %v594_v21  ;;  %3660 = vmatmul.mubr.msk.f32.vlgmr.msra.gmra.mrb[0].mxu1 %vm498_vm1, %v4625_v24  ;;  %v4635_v26 = vld [vmem:[#allocation2 + $0x60] sm:$0xff]  ;;  %v4640_v27 = vld [vmem:[#allocation2 + $0x68] sm:$0xff] }
  0x65   : > { %2024 = vst [vmem:[#allocation3 + $0x29] sm:$0x1] %v4391_v0  ;;  %2025 = vst [vmem:[#allocation3 + $0x41] sm:$0x1] %v4391_v0  ;;  %3377 = vmatpush1.msk.msra.mxu0 %vm649_vm2, %v3374_v19  ;;  %3662 = vmatprep.mubr.msk.f32.mxu1 %vm498_vm1, %v4627_v25  ;;  %v4644_v28 = vld [vmem:[#allocation2 + $0x20] sm:$0xff]  ;;  %v4654_v30 = vld [vmem:[#allocation2 + $0x70] sm:$0xff] }
  0x66   : > { %2026 = vst [vmem:[#allocation3 + $0x59] sm:$0x1] %v4391_v0  ;;  %2027 = vst [vmem:[#allocation3 + $0x71] sm:$0x1] %v4391_v0  ;;  %3378 = vmatmul.mubr.msk.f32.vlgmr.msra.gmra.mrb[0].mxu0 %vm498_vm1, %v4620_v23  ;;  %3648 = vmatprep.subr.msk.mxu0 %vm649_vm2, %v3375_v20  ;;  %v569_v29 = vld [vmem:[%s5251_s3 + $0x8] sm:$0xf] }
  0x67   : > { %2028 = vst [vmem:[#allocation3 + $0x89] sm:$0x1] %v4391_v0  ;;  %3649 = vmatpush3.msk.msra.mxu0 %vm649_vm2, %v3375_v20  ;;  %726 = vmatprep.mubr.f32.mxu0 %v4391_v0  ;;  %v3455_v31 = vld [vmem:[%s5251_s3 + $0x20] sm:$0xf]  ;;  %v4667_v33 = vld [vmem:[#allocation2 + $0x78] sm:$0xff]  ;;  %v4673_v35 = vld [vmem:[#allocation2 + $0x28] sm:$0xff] }
  0x68   : > { %3663 = vmatmul.mubr.msk.f32.gmra.mrb[2].mxu1 %vm498_vm1, %v4635_v26  ;;  %3677 = vmatprep.subr.msk.mxu1 %vm649_vm2, %v569_v29  ;;  %v4663_v32 = vld [vmem:[%s5251_s3] sm:$0xff]  ;;  %v4684_v37 = vld [vmem:[#allocation2 + $0x88] sm:$0xff]  ;;  %v4687_v38 = vld [vmem:[#allocation2 + $0x30] sm:$0xff]  ;;  %vm1908_vm3 = vcmask 1045504   ;;  %vm1835_vm4 = vcmask 1046528  }
  0x69   : > { %3665 = vmatprep.mubr.msk.f32.mxu1 %vm498_vm1, %v4640_v27  ;;  %3678 = vmatpush3.msk.msra.mxu1 %vm649_vm2, %v569_v29  ;;  %v980_v34 = vcombine.high %v4663_v32, %v4663_v32  ;;  %v4680_v36 = vld [vmem:[#allocation2 + $0x80] sm:$0xff]  ;;  %v4693_v39 = vld [vmem:[#allocation2 + $0x90] sm:$0xff]  ;;  %v4697_v40 = vld [vmem:[#allocation2 + $0x98] sm:$0xff] }
  0x6a   : > { %3379 = vmatmul.mubr.msk.f32.gmra.mrb[2].mxu0 %vm498_vm1, %v4644_v28  ;;  %3706 = vmatprep.subr.msk.mxu1 %vm649_vm2, %v3455_v31  ;;  %v4700_v41 = vld [vmem:[#allocation2 + $0x38] sm:$0xff]  ;;  %v4706_v42 = vld [vmem:[#allocation2 + $0xa0] sm:$0xff]  ;;  %v4719_v45 = vld [vmem:[#allocation2 + $0x8] sm:$0xff] }
  0x6b   : > { %732 = vmatprep.mubr.f32.mxu0 %v4391_v0  ;;  %3415 = vmatprep.subr.msk.mxu0 %vm649_vm2, %v980_v34  ;;  %v4710_v43 = vld [vmem:[#allocation2] sm:$0xff]  ;;  %v4723_v46 = vld [vmem:[#allocation2 + $0x10] sm:$0xff]  ;;  %v3454_v47 = vld [vmem:[%s5251_s3 + $0x18] sm:$0xff] }
  0x6c   : > { %3666 = vmatmul.mubr.msk.f32.gmra.mrb[4].mxu1 %vm498_vm1, %v4654_v30  ;;  %v4713_v44 = vld [vmem:[#allocation2 + $0x40] sm:$0xff]  ;;  %v1386_v48 = vcombine.high %v3454_v47, %v3454_v47  ;;  %v4845_v49 = vld [vmem:[#allocation2 + $0xa8] sm:$0xff]  ;;  %v4849_v50 = vld [vmem:[#allocation2 + $0xb0] sm:$0xff] }
  0x6d   : > { %3668 = vmatprep.mubr.msk.f32.mxu1 %vm498_vm1, %v4667_v33  ;;  %v4857_v51 = vld [vmem:[#allocation2 + $0xb8] sm:$0xff] }
  0x6e   : > { %3380 = vmatmul.mubr.msk.f32.gmra.mrb[4].mxu0 %vm498_vm1, %v4673_v35 }
  0x6f   : > { %737 = vmatprep.mubr.f32.mxu0 %v4391_v0 }
  0x70   : > { %3669 = vmatmul.mubr.msk.f32.gmra.mrb[6].mxu1 %vm498_vm1, %v4680_v36 }
  0x71   : > { %3671 = vmatprep.mubr.msk.f32.mxu1 %vm498_vm1, %v4684_v37 }
  0x72   : > { %3381 = vmatmul.mubr.msk.f32.gmra.mrb[6].mxu0 %vm498_vm1, %v4687_v38 }
  0x73   : > { %743 = vmatprep.mubr.f32.mxu0 %v4391_v0 }
  0x74   : > { %3672 = vmatmul.mubr.msk.f32.gmra.mrb[8].mxu1 %vm498_vm1, %v4693_v39 }
  0x75   : > { %3674 = vmatprep.mubr.msk.f32.mxu1 %vm498_vm1, %v4697_v40 }
  0x76   : > { %3382 = vmatmul.mubr.msk.f32.gmra.mrb[8].mxu0 %vm498_vm1, %v4700_v41 }
  0x77   : > { %749 = vmatprep.mubr.f32.mxu0 %v4391_v0 }
  0x78   : > { %3675 = vmatmul.mubr.msk.f32.gmra.mrb[10].mxu1 %vm498_vm1, %v4706_v42 }
  0x79   : > { %3679 = vmatprep.mubr.msk.f32.mxu1 %vm498_vm1, %v4710_v43 }
  0x7a   : > { %3383 = vmatmul.mubr.msk.f32.gmra.mrb[10].mxu0 %vm498_vm1, %v4713_v44 }
  0x7b   : > { %754 = vmatprep.mubr.f32.mxu0 %v4391_v0 }
  0x7c   : > { %3680 = vmatmul.mubr.msk.f32.vlgmr.msra.gmra.mrb[12].mxu1 %vm498_vm1, %v4719_v45 }
  0x7d   : > { %3682 = vmatprep.mubr.msk.f32.mxu1 %vm498_vm1, %v4723_v46  ;;  %3707 = vmatpush3.msk.msra.mxu1 %vm649_vm2, %v3455_v31 }
  0x7e   : > { %3384 = vmatmul.mubr.msk.f32.gmra.mrb[12].mxu0 %vm498_vm1, %v4618_v22 }
  0x7f   : > { %760 = vmatprep.mubr.f32.mxu0 %v4391_v0 }
  0x80   : > { %3683 = vmatmul.mubr.msk.f32.gmra.mrb[14].mxu1 %vm498_vm1, %v4620_v23 }
  0x81   : > { %3685 = vmatprep.mubr.msk.f32.mxu1 %vm498_vm1, %v4644_v28 }
  0x82   : > { %3385 = vmatmul.mubr.msk.f32.gmra.mrb[14].mxu0 %vm498_vm1, %v4625_v24 }
  0x83   : > { %766 = vmatprep.mubr.f32.mxu0 %v4391_v0 }
  0x84   : > { %3686 = vmatmul.mubr.msk.f32.gmra.mrb[16].mxu1 %vm498_vm1, %v4673_v35 }
  0x85   : > { %3688 = vmatprep.mubr.msk.f32.mxu1 %vm498_vm1, %v4687_v38 }
  0x86   : > { %3386 = vmatmul.mubr.msk.f32.gmra.mrb[16].mxu0 %vm498_vm1, %v4627_v25 }
  0x87   : > { %771 = vmatprep.mubr.f32.mxu0 %v4391_v0 }
  0x88   : > { %3689 = vmatmul.mubr.msk.f32.gmra.mrb[0].mxu1 %vm498_vm1, %v4700_v41 }
  0x89   : > { %3691 = vmatprep.mubr.msk.f32.mxu1 %vm498_vm1, %v4713_v44 }
  0x8a   : > { %3387 = vmatmul.mubr.msk.f32.gmra.mrb[18].mxu0 %vm498_vm1, %v4635_v26 }
  0x8b   : > { %777 = vmatprep.mubr.f32.mxu0 %v4391_v0 }
  0x8c   : > { %3692 = vmatmul.mubr.msk.f32.gmra.mrb[2].mxu1 %vm498_vm1, %v4618_v22 }
  0x8d   : > { %3694 = vmatprep.mubr.msk.f32.mxu1 %vm498_vm1, %v4625_v24 }
  0x8e   : > { %3388 = vmatmul.mubr.msk.f32.gmra.mrb[20].mxu0 %vm498_vm1, %v4640_v27 }
  0x8f   : > { %783 = vmatprep.mubr.f32.mxu0 %v4391_v0 }
  0x90   : > { %3695 = vmatmul.mubr.msk.f32.gmra.mrb[4].mxu1 %vm498_vm1, %v4627_v25 }
  0x91   : > { %3697 = vmatprep.mubr.msk.f32.mxu1 %vm498_vm1, %v4635_v26 }
  0x92   : > { %3389 = vmatmul.mubr.msk.f32.gmra.mrb[22].mxu0 %vm498_vm1, %v4654_v30 }
  0x93   : > { %788 = vmatprep.mubr.f32.mxu0 %v4391_v0 }
  0x94   : > { %3698 = vmatmul.mubr.msk.f32.gmra.mrb[6].mxu1 %vm498_vm1, %v4640_v27 }
  0x95   : > { %3700 = vmatprep.mubr.msk.f32.mxu1 %vm498_vm1, %v4654_v30 }
  0x96   : > { %3390 = vmatmul.mubr.msk.f32.gmra.mrb[24].mxu0 %vm498_vm1, %v4667_v33 }
  0x97   : > { %794 = vmatprep.mubr.f32.mxu0 %v4391_v0 }
  0x98   : > { %3701 = vmatmul.mubr.msk.f32.gmra.mrb[8].mxu1 %vm498_vm1, %v4667_v33 }
  0x99   : > { %3703 = vmatprep.mubr.msk.f32.mxu1 %vm498_vm1, %v4680_v36 }
  0x9a   : > { %3391 = vmatmul.mubr.msk.f32.gmra.mrb[26].mxu0 %vm498_vm1, %v4680_v36 }
  0x9b   : > { %800 = vmatprep.mubr.f32.mxu0 %v4391_v0 }
  0x9c   : > { %3704 = vmatmul.mubr.msk.f32.gmra.mrb[10].mxu1 %vm498_vm1, %v4684_v37 }
  0x9d   : > { %3708 = vmatprep.mubr.msk.f32.mxu1 %vm498_vm1, %v4687_v38 }
  0x9e   : > { %3392 = vmatmul.mubr.msk.f32.gmra.mrb[28].mxu0 %vm498_vm1, %v4684_v37 }
  0x9f   : > { %805 = vmatprep.mubr.f32.mxu0 %v4391_v0 }
  0xa0   : > { %3709 = vmatmul.mubr.msk.f32.vlgmr.msra.gmra.mrb[12].mxu1 %vm498_vm1, %v4700_v41 }
  0xa1   : > { %3711 = vmatprep.mubr.msk.f32.mxu1 %vm498_vm1, %v4713_v44 }
  0xa2   : > { %3393 = vmatmul.mubr.msk.f32.gmra.mrb[30].mxu0 %vm498_vm1, %v4693_v39 }
  0xa3   : > { %811 = vmatprep.mubr.f32.mxu0 %v4391_v0 }
  0xa4   : > { %3712 = vmatmul.mubr.msk.f32.gmra.mrb[14].mxu1 %vm498_vm1, %v4618_v22 }
  0xa5   : > { %3714 = vmatprep.mubr.msk.f32.mxu1 %vm498_vm1, %v4625_v24 }
  0xa6   : > { %3394 = vmatmul.mubr.msk.f32.gmra.mrb[32].mxu0 %vm498_vm1, %v4697_v40 }
  0xa7   : > { %817 = vmatprep.mubr.f32.mxu0 %v4391_v0 }
  0xa8   : > { %3715 = vmatmul.mubr.msk.f32.gmra.mrb[16].mxu1 %vm498_vm1, %v4627_v25 }
  0xa9   : > { %3717 = vmatprep.mubr.msk.f32.mxu1 %vm498_vm1, %v4635_v26 }
  0xaa   : > { %3395 = vmatmul.mubr.msk.f32.gmra.mrb[34].mxu0 %vm498_vm1, %v4706_v42 }
  0xab   : > { %3650 = vmatprep.mubr.msk.f32.mxu0 %vm498_vm1, %v4620_v23 }
  0xac   : > { %3718 = vmatmul.mubr.msk.f32.gmra.mrb[0].mxu1 %vm498_vm1, %v4640_v27 }
  0xad   : > { %3720 = vmatprep.mubr.msk.f32.mxu1 %vm498_vm1, %v4654_v30 }
  0xae   : > { %3651 = vmatmul.mubr.msk.f32.vlgmr.msra.gmra.mrb[36].mxu0 %vm498_vm1, %v4644_v28 }
  0xaf   : > { %3416 = vmatpush1.msk.msra.mxu0 %vm649_vm2, %v4663_v32  ;;  %3653 = vmatprep.mubr.msk.f32.mxu0 %vm498_vm1, %v4673_v35 }
  0xb0   : > { %3456 = vmatprep.subr.msk.mxu0 %vm649_vm2, %v1386_v48  ;;  %3721 = vmatmul.mubr.msk.f32.gmra.mrb[2].mxu1 %vm498_vm1, %v4667_v33 }
  0xb1   : > { %3723 = vmatprep.mubr.msk.f32.mxu1 %vm498_vm1, %v4680_v36 }
  0xb2   : > { %3654 = vmatmul.mubr.msk.f32.gmra.mrb[38].mxu0 %vm498_vm1, %v4687_v38 }
  0xb3   : > { %3656 = vmatprep.mubr.msk.f32.mxu0 %vm498_vm1, %v4700_v41 }
  0xb4   : > { %3724 = vmatmul.mubr.msk.f32.gmra.mrb[4].mxu1 %vm498_vm1, %v4684_v37 }
  0xb5   : > { %3726 = vmatprep.mubr.msk.f32.mxu1 %vm498_vm1, %v4693_v39 }
  0xb6   : > { %3657 = vmatmul.mubr.msk.f32.gmra.mrb[40].mxu0 %vm498_vm1, %v4713_v44 }
  0xb7   : > { %1105 = vmatprep.mubr.f32.mxu0 %v4391_v0 }
  0xb8   : > { %3727 = vmatmul.mubr.msk.f32.gmra.mrb[6].mxu1 %vm498_vm1, %v4697_v40 }
  0xb9   : > { %3729 = vmatprep.mubr.msk.f32.mxu1 %vm498_vm1, %v4706_v42 }
  0xba   : > { %3417 = vmatmul.mubr.msk.f32.vlgmr.msra.gmra.mrb[0].mxu0 %vm498_vm1, %v4710_v43 }
  0xbb   : > { %3457 = vmatpush1.msk.msra.mxu0 %vm649_vm2, %v3454_v47  ;;  %1111 = vmatprep.mubr.f32.mxu0 %v4391_v0 }
  0xbc   : > { %3730 = vmatmul.mubr.msk.f32.gmra.mrb[8].mxu1 %vm498_vm1, %v4845_v49 }
  0xbd   : > { %3732 = vmatprep.mubr.msk.f32.mxu1 %vm498_vm1, %v4849_v50 }
  0xbe   : > { %3418 = vmatmul.mubr.msk.f32.gmra.mrb[2].mxu0 %vm498_vm1, %v4719_v45 }
  0xbf   : > { %1117 = vmatprep.mubr.f32.mxu0 %v4391_v0 }
  0xc0   : > { %3733 = vmatmul.mubr.msk.f32.gmra.mrb[10].mxu1 %vm498_vm1, %v4857_v51 }
  0xc2   : > { %3419 = vmatmul.mubr.msk.f32.gmra.mrb[4].mxu0 %vm498_vm1, %v4723_v46 }
  0xc3   : > { %1122 = vmatprep.mubr.f32.mxu0 %v4391_v0 }
  0xc6   : > { %3420 = vmatmul.mubr.msk.f32.gmra.mrb[6].mxu0 %vm498_vm1, %v4620_v23 }
  0xc7   : > { %1128 = vmatprep.mubr.f32.mxu0 %v4391_v0 }
  0xca   : > { %3421 = vmatmul.mubr.msk.f32.gmra.mrb[8].mxu0 %vm498_vm1, %v4644_v28 }
  0xcb   : > { %1134 = vmatprep.mubr.f32.mxu0 %v4391_v0 }
  0xce   : > { %3422 = vmatmul.mubr.msk.f32.gmra.mrb[10].mxu0 %vm498_vm1, %v4673_v35 }
  0xcf   : > { %1139 = vmatprep.mubr.f32.mxu0 %v4391_v0 }
  0xd2   : > { %3423 = vmatmul.mubr.msk.f32.gmra.mrb[12].mxu0 %vm498_vm1, %v4687_v38 }
  0xd3   : > { %1145 = vmatprep.mubr.f32.mxu0 %v4391_v0 }
  0xd6   : > { %3424 = vmatmul.mubr.msk.f32.gmra.mrb[14].mxu0 %vm498_vm1, %v4700_v41 }
  0xd7   : > { %1151 = vmatprep.mubr.f32.mxu0 %v4391_v0 }
  0xda   : > { %3425 = vmatmul.mubr.msk.f32.gmra.mrb[16].mxu0 %vm498_vm1, %v4713_v44 }
  0xdb   : > { %1156 = vmatprep.mubr.f32.mxu0 %v4391_v0 }
  0xde   : > { %3426 = vmatmul.mubr.msk.f32.gmra.mrb[18].mxu0 %vm498_vm1, %v4618_v22 }
  0xdf   : > { %1162 = vmatprep.mubr.f32.mxu0 %v4391_v0 }
  0xe2   : > { %3427 = vmatmul.mubr.msk.f32.gmra.mrb[20].mxu0 %vm498_vm1, %v4625_v24 }
  0xe3   : > { %1168 = vmatprep.mubr.f32.mxu0 %v4391_v0 }
  0xe6   : > { %3428 = vmatmul.mubr.msk.f32.gmra.mrb[22].mxu0 %vm498_vm1, %v4627_v25 }
  0xe7   : > { %1173 = vmatprep.mubr.f32.mxu0 %v4391_v0 }
  0xea   : > { %3429 = vmatmul.mubr.msk.f32.gmra.mrb[24].mxu0 %vm498_vm1, %v4635_v26 }
  0xeb   : > { %1179 = vmatprep.mubr.f32.mxu0 %v4391_v0 }
  0xee   : > { %3430 = vmatmul.mubr.msk.f32.gmra.mrb[26].mxu0 %vm498_vm1, %v4640_v27 }
  0xef   : > { %1185 = vmatprep.mubr.f32.mxu0 %v4391_v0 }
  0xf2   : > { %3431 = vmatmul.mubr.msk.f32.gmra.mrb[28].mxu0 %vm498_vm1, %v4654_v30 }
  0xf3   : > { %1190 = vmatprep.mubr.f32.mxu0 %v4391_v0 }
  0xf6   : > { %3432 = vmatmul.mubr.msk.f32.gmra.mrb[30].mxu0 %vm498_vm1, %v4667_v33 }
  0xf7   : > { %1196 = vmatprep.mubr.f32.mxu0 %v4391_v0 }
  0xfa   : > { %3433 = vmatmul.mubr.msk.f32.gmra.mrb[32].mxu0 %vm498_vm1, %v4680_v36 }
  0xfb   : > { %1202 = vmatprep.mubr.f32.mxu0 %v4391_v0 }
  0xfe   : > { %3434 = vmatmul.mubr.msk.f32.gmra.mrb[34].mxu0 %vm498_vm1, %v4684_v37 }
  0xff   : > { %1511 = vmatprep.mubr.f32.mxu0 %v4391_v0 }
 0x102   : > { %3458 = vmatmul.mubr.msk.f32.vlgmr.msra.gmra.mrb[0].mxu0 %vm498_vm1, %v4687_v38 }
 0x103   : > { %1517 = vmatprep.mubr.f32.mxu0 %v4391_v0 }
 0x106   : > { %3459 = vmatmul.mubr.msk.f32.gmra.mrb[2].mxu0 %vm498_vm1, %v4700_v41 }
 0x107   : > { %1523 = vmatprep.mubr.f32.mxu0 %v4391_v0 }
 0x10a   : > { %3460 = vmatmul.mubr.msk.f32.gmra.mrb[4].mxu0 %vm498_vm1, %v4713_v44 }
 0x10b   : > { %1528 = vmatprep.mubr.f32.mxu0 %v4391_v0 }
 0x10e   : > { %3461 = vmatmul.mubr.msk.f32.gmra.mrb[6].mxu0 %vm498_vm1, %v4618_v22 }
 0x10f   : > { %1534 = vmatprep.mubr.f32.mxu0 %v4391_v0 }
 0x112   : > { %3462 = vmatmul.mubr.msk.f32.gmra.mrb[8].mxu0 %vm498_vm1, %v4625_v24 }
 0x113   : > { %1540 = vmatprep.mubr.f32.mxu0 %v4391_v0 }
 0x116   : > { %3463 = vmatmul.mubr.msk.f32.gmra.mrb[10].mxu0 %vm498_vm1, %v4627_v25 }
 0x117   : > { %1545 = vmatprep.mubr.f32.mxu0 %v4391_v0 }
 0x11a   : > { %3464 = vmatmul.mubr.msk.f32.gmra.mrb[12].mxu0 %vm498_vm1, %v4635_v26 }
 0x11b   : > { %1551 = vmatprep.mubr.f32.mxu0 %v4391_v0 }
 0x11e   : > { %3465 = vmatmul.mubr.msk.f32.gmra.mrb[14].mxu0 %vm498_vm1, %v4640_v27 }
 0x11f   : > { %1557 = vmatprep.mubr.f32.mxu0 %v4391_v0 }
 0x122   : > { %3466 = vmatmul.mubr.msk.f32.gmra.mrb[16].mxu0 %vm498_vm1, %v4654_v30 }
 0x123   : > { %1562 = vmatprep.mubr.f32.mxu0 %v4391_v0 }
 0x126   : > { %3467 = vmatmul.mubr.msk.f32.gmra.mrb[18].mxu0 %vm498_vm1, %v4667_v33 }
 0x127   : > { %1568 = vmatprep.mubr.f32.mxu0 %v4391_v0 }
 0x12a   : > { %3468 = vmatmul.mubr.msk.f32.gmra.mrb[20].mxu0 %vm498_vm1, %v4680_v36 }
 0x12b   : > { %1574 = vmatprep.mubr.f32.mxu0 %v4391_v0 }
 0x12e   : > { %3469 = vmatmul.mubr.msk.f32.gmra.mrb[22].mxu0 %vm498_vm1, %v4684_v37 }
 0x12f   : > { %1579 = vmatprep.mubr.f32.mxu0 %v4391_v0 }
 0x132   : > { %3470 = vmatmul.mubr.msk.f32.gmra.mrb[24].mxu0 %vm498_vm1, %v4693_v39 }
 0x133   : > { %1585 = vmatprep.mubr.f32.mxu0 %v4391_v0 }
 0x136   : > { %3471 = vmatmul.mubr.msk.f32.gmra.mrb[26].mxu0 %vm498_vm1, %v4697_v40 }
 0x137   : > { %1591 = vmatprep.mubr.f32.mxu0 %v4391_v0 }
 0x13a   : > { %3472 = vmatmul.mubr.msk.f32.gmra.mrb[28].mxu0 %vm498_vm1, %v4706_v42 }
 0x13b   : > { %1596 = vmatprep.mubr.f32.mxu0 %v4391_v0 }
 0x13e   : > { %3473 = vmatmul.mubr.msk.f32.gmra.mrb[30].mxu0 %vm498_vm1, %v4845_v49 }
 0x13f   : > { %1602 = vmatprep.mubr.f32.mxu0 %v4391_v0 }
 0x142   : > { %3474 = vmatmul.mubr.msk.f32.gmra.mrb[32].mxu0 %vm498_vm1, %v4849_v50 }
 0x143   : > { %1608 = vmatprep.mubr.f32.mxu0 %v4391_v0 }
 0x146   : > { %3475 = vmatmul.mubr.msk.f32.gmra.mrb[34].mxu0 %vm498_vm1, %v4857_v51 }
 0x173   : > { %v3710_v52 = vpop.f32.mrb[12].mxu1 }
 0x174   : > { %v1680_v53 = vpop.f32.mrb[13].mxu1 }
 0x177   : > { %v3713_v54 = vpop.f32.mrb[14].mxu1 }
 0x178   : > { %v1690_v55 = vpop.f32.mrb[15].mxu1 }
 0x17b   : > { %v3716_v56 = vpop.f32.mrb[16].mxu1 }
 0x17c   : > { %v1700_v57 = vpop.f32.mrb[17].mxu1 }
 0x17f   : > { %v3719_v58 = vpop.f32.mrb[0].mxu1 }
 0x180   : > { %v1920_v59 = vrot.slane %v3719_v58, 2  ;;  %v1710_v60 = vpop.f32.mrb[1].mxu1 }
 0x181   : > { %v3652_v61 = vpop.f32.mrb[36].mxu0  ;;  %v1919_v62 = vrot.slane %v1710_v60, 2 }
 0x182   : > { %v4079_v63 = vadd.f32 %v3710_v52, %v3652_v61  ;;  %v889_v1 = vpop.f32.mrb[37].mxu0 }
 0x183   : > { %v4080_v2 = vadd.f32 %v1680_v53, %v889_v1  ;;  %v4966_v3 = vsel %vm1908_vm3, %v1919_v62, %v1920_v59  ;;  %v3722_v4 = vpop.f32.mrb[2].mxu1 }
 0x184   : > { %v1910_v5 = vrot.slane %v4079_v63, 2  ;;  %v1720_v6 = vpop.f32.mrb[3].mxu1  ;;  %v1924_v14 = vrot.slane %v3722_v4, 2 }
 0x185   : > { %v1909_v7 = vrot.slane %v4080_v2, 2  ;;  %v3655_v8 = vpop.f32.mrb[38].mxu0  ;;  %v1922_v9 = vrot.slane %v1720_v6, 2 }
 0x186   : > { %v4081_v10 = vadd.f32 %v3713_v54, %v3655_v8  ;;  %v899_v11 = vpop.f32.mrb[39].mxu0 }
 0x187   : > { %v1911_v12 = vsel %vm1908_vm3, %v1909_v7, %v1910_v5  ;;  %v4082_v13 = vadd.f32 %v1690_v55, %v899_v11  ;;  %v4970_v15 = vsel %vm1908_vm3, %v1920_v59, %v1922_v9  ;;  %v3725_v16 = vpop.f32.mrb[4].mxu1  ;;  %v4997_v59 = vld [vmem:[%s5252_s4] ss:$0 sm:$0xff] }
 0x188   : > { %v1927_v17 = vrot.slane %v3725_v16, 2  ;;  %v1730_v18 = vpop.f32.mrb[5].mxu1  ;;  %v1914_v32 = vrot.slane %v4081_v10, 2 }
 0x189   : > { %v1912_v19 = vrot.slane %v4082_v13, 2  ;;  %v3658_v20 = vpop.f32.mrb[40].mxu0  ;;  %v1925_v21 = vrot.slane %v1730_v18, 2 }
 0x18a   : > { %v4083_v22 = vadd.f32 %v3716_v56, %v3658_v20  ;;  %v909_v23 = vpop.f32.mrb[41].mxu0 }
 0x18b   : > { %v1913_v24 = vsel %vm1908_vm3, %v1910_v5, %v1912_v19  ;;  %v4084_v25 = vadd.f32 %v1700_v57, %v909_v23  ;;  %v4974_v26 = vsel %vm1908_vm3, %v1924_v14, %v1925_v21  ;;  %v4977_v27 = vsel %vm1908_vm3, %v1925_v21, %v1927_v17  ;;  %v3728_v28 = vpop.f32.mrb[6].mxu1 }
 0x18c   : > { %v1917_v29 = vrot.slane %v4083_v22, 2  ;;  %v1930_v30 = vrot.slane %v3728_v28, 2  ;;  %v1740_v31 = vpop.f32.mrb[7].mxu1 }
 0x18d   : > { %v1915_v33 = vrot.slane %v4084_v25, 2  ;;  %v1929_v34 = vrot.slane %v1740_v31, 2 }
 0x18f   : > { %v1916_v35 = vsel %vm1908_vm3, %v1914_v32, %v1915_v33  ;;  %v1918_v36 = vsel %vm1908_vm3, %v1915_v33, %v1917_v29  ;;  %v4982_v37 = vsel %vm1908_vm3, %v1929_v34, %v1930_v30  ;;  %v3731_v38 = vpop.f32.mrb[8].mxu1 }
 0x190   : > { %v1750_v39 = vpop.f32.mrb[9].mxu1  ;;  %v1934_v41 = vrot.slane %v3731_v38, 2 }
 0x191   : > { %v1932_v40 = vrot.slane %v1750_v39, 2 }
 0x193   : > { %v4985_v42 = vsel %vm1908_vm3, %v1930_v30, %v1932_v40  ;;  %v3734_v43 = vpop.f32.mrb[10].mxu1 }
 0x194   : > { %v1937_v44 = vrot.slane %v3734_v43, 2  ;;  %v1760_v45 = vpop.f32.mrb[11].mxu1 }
 0x195   : > { %v1935_v46 = vrot.slane %v1760_v45, 2 }
 0x197   : > { %v4988_v47 = vsel %vm1908_vm3, %v1934_v41, %v1935_v46  ;;  %v4991_v48 = vsel %vm1908_vm3, %v1935_v46, %v1937_v44 }
 0x1d5   : > { %v1513_v49 = vpop.f32.mrb[0].mxu0 }
 0x1d6   : > { %v1515_v50 = vpop.f32.mrb[1].mxu0 }
 0x1d7   : > { %v1836_v53 = vrot.slane %v1515_v50, 1 }
 0x1d9   : > { %v1519_v51 = vpop.f32.mrb[2].mxu0 }
 0x1da   : > { %v1521_v52 = vpop.f32.mrb[3].mxu0 }
 0x1db   : > { %v1837_v54 = vrot.slane %v1521_v52, 1 }
 0x1dd   : > { %v1838_v55 = vsel %vm1835_vm4, %v1836_v53, %v1837_v54  ;;  %v1525_v56 = vpop.f32.mrb[4].mxu0 }
 0x1de   : > { %v1878_v57 = vadd.f32 %v1838_v55, %v1513_v49  ;;  %v1526_v58 = vpop.f32.mrb[5].mxu0 }
 0x1df   : > { %v1839_v60 = vrot.slane %v1526_v58, 1 }
 0x1e0   : > { %v1951_v61 = vadd.f32 %v1911_v12, %v1878_v57 }
 0x1e1   : > { %v1840_v62 = vsel %vm1835_vm4, %v1837_v54, %v1839_v60  ;;  %v1530_v63 = vpop.f32.mrb[6].mxu0 }
 0x1e2   : > { %v1969_v1 = vadd.f32 %v4997_v59, %v1951_v61  ;;  %v1879_v2 = vadd.f32 %v1840_v62, %v1519_v51  ;;  %v1532_v4 = vpop.f32.mrb[7].mxu0 }
 0x1e3   : > { %v1841_v11 = vrot.slane %v1532_v4, 1 }
 0x1e4   : > { %vm1981_vm5 = vcmp.ge.f32.partialorder %v1969_v1, 0.0  ;;  %v1993_v5 = vmul.f32 0.125, %v1969_v1  ;;  %v1952_v6 = vadd.f32 %v1913_v24, %v1879_v2 }
 0x1e5   : > { %v1536_v7 = vpop.f32.mrb[8].mxu0 }
 0x1e6   : > { %v2005_v8 = vsel %vm1981_vm5, %v1969_v1, %v1993_v5  ;;  %v1970_v9 = vadd.f32 %v4997_v59, %v1952_v6  ;;  %v1538_v10 = vpop.f32.mrb[9].mxu0 }
 0x1e7   : > { %2029 = vst [vmem:[#allocation3 + $0x1] sm:$0xff] %v2005_v8  ;;  %v1842_v13 = vrot.slane %v1538_v10, 1 }
 0x1e8   : > { %vm1982_vm6 = vcmp.ge.f32.partialorder %v1970_v9, 0.0  ;;  %v1994_v12 = vmul.f32 0.125, %v1970_v9 }
 0x1e9   : > { %v1843_v14 = vsel %vm1835_vm4, %v1841_v11, %v1842_v13  ;;  %v1542_v16 = vpop.f32.mrb[10].mxu0 }
 0x1ea   : > { %v2006_v17 = vsel %vm1982_vm6, %v1970_v9, %v1994_v12  ;;  %v1880_v18 = vadd.f32 %v1843_v14, %v1530_v63  ;;  %v1543_v19 = vpop.f32.mrb[11].mxu0 }
 0x1eb   : > { %2030 = vst [vmem:[#allocation3 + $0x9] sm:$0xff] %v2006_v17  ;;  %v1844_v20 = vrot.slane %v1543_v19, 1 }
 0x1ec   : > { %v1953_v21 = vadd.f32 %v1916_v35, %v1880_v18 }
 0x1ed   : > { %v1845_v22 = vsel %vm1835_vm4, %v1842_v13, %v1844_v20  ;;  %v1547_v23 = vpop.f32.mrb[12].mxu0 }
 0x1ee   : > { %v1971_v24 = vadd.f32 %v4997_v59, %v1953_v21  ;;  %v1881_v25 = vadd.f32 %v1845_v22, %v1536_v7  ;;  %v1549_v28 = vpop.f32.mrb[13].mxu0 }
 0x1ef   : > { %v1846_v38 = vrot.slane %v1549_v28, 1 }
 0x1f0   : > { %vm1983_vm7 = vcmp.ge.f32.partialorder %v1971_v24, 0.0  ;;  %v1995_v29 = vmul.f32 0.125, %v1971_v24  ;;  %v1954_v30 = vadd.f32 %v1918_v36, %v1881_v25 }
 0x1f1   : > { %v1553_v31 = vpop.f32.mrb[14].mxu0 }
 0x1f2   : > { %v2007_v32 = vsel %vm1983_vm7, %v1971_v24, %v1995_v29  ;;  %v1972_v33 = vadd.f32 %v4997_v59, %v1954_v30  ;;  %v1555_v34 = vpop.f32.mrb[15].mxu0 }
 0x1f3   : > { %2031 = vst [vmem:[#allocation3 + $0x19] sm:$0xff] %v2007_v32  ;;  %v1847_v39 = vrot.slane %v1555_v34, 1 }
 0x1f4   : > { %vm1984_vm8 = vcmp.ge.f32.partialorder %v1972_v33, 0.0  ;;  %v1996_v35 = vmul.f32 0.125, %v1972_v33 }
 0x1f5   : > { %v1848_v40 = vsel %vm1835_vm4, %v1846_v38, %v1847_v39  ;;  %v1559_v41 = vpop.f32.mrb[16].mxu0 }
 0x1f6   : > { %v2008_v43 = vsel %vm1984_vm8, %v1972_v33, %v1996_v35  ;;  %v1882_v44 = vadd.f32 %v1848_v40, %v1547_v23  ;;  %v1560_v45 = vpop.f32.mrb[17].mxu0 }
 0x1f7   : > { %2032 = vst [vmem:[#allocation3 + $0x21] sm:$0xff] %v2008_v43  ;;  %v1849_v46 = vrot.slane %v1560_v45, 1 }
 0x1f8   : > { %v1955_v36 = vadd.f32 %v4966_v3, %v1882_v44 }
 0x1f9   : > { %v1850_v49 = vsel %vm1835_vm4, %v1847_v39, %v1849_v46  ;;  %v1564_v50 = vpop.f32.mrb[18].mxu0 }
 0x1fa   : > { %v1973_v51 = vadd.f32 %v4997_v59, %v1955_v36  ;;  %v1883_v52 = vadd.f32 %v1850_v49, %v1553_v31  ;;  %v1566_v53 = vpop.f32.mrb[19].mxu0 }
 0x1fb   : > { %v1851_v61 = vrot.slane %v1566_v53, 1 }
 0x1fc   : > { %vm1985_vm9 = vcmp.ge.f32.partialorder %v1973_v51, 0.0  ;;  %v1997_v54 = vmul.f32 0.125, %v1973_v51  ;;  %v1956_v55 = vadd.f32 %v4970_v15, %v1883_v52 }
 0x1fd   : > { %v1570_v56 = vpop.f32.mrb[20].mxu0 }
 0x1fe   : > { %v2009_v57 = vsel %vm1985_vm9, %v1973_v51, %v1997_v54  ;;  %v1974_v58 = vadd.f32 %v4997_v59, %v1956_v55  ;;  %v1572_v60 = vpop.f32.mrb[21].mxu0 }
 0x1ff   : > { %2033 = vst [vmem:[#allocation3 + $0x31] sm:$0xff] %v2009_v57  ;;  %v1852_v62 = vrot.slane %v1572_v60, 1 }
 0x200   : > { %vm1986_vm10 = vcmp.ge.f32.partialorder %v1974_v58, 0.0  ;;  %v1998_v3 = vmul.f32 0.125, %v1974_v58 }
 0x201   : > { %v1853_v63 = vsel %vm1835_vm4, %v1851_v61, %v1852_v62  ;;  %v1576_v1 = vpop.f32.mrb[22].mxu0 }
 0x202   : > { %v2010_v2 = vsel %vm1986_vm10, %v1974_v58, %v1998_v3  ;;  %v1884_v4 = vadd.f32 %v1853_v63, %v1564_v50  ;;  %v1577_v5 = vpop.f32.mrb[23].mxu0 }
 0x203   : > { %2034 = vst [vmem:[#allocation3 + $0x39] sm:$0xff] %v2010_v2  ;;  %v1854_v6 = vrot.slane %v1577_v5, 1 }
 0x204   : > { %v1957_v15 = vadd.f32 %v4974_v26, %v1884_v4 }
 0x205   : > { %v1855_v7 = vsel %vm1835_vm4, %v1852_v62, %v1854_v6  ;;  %v1581_v8 = vpop.f32.mrb[24].mxu0 }
 0x206   : > { %v1975_v9 = vadd.f32 %v4997_v59, %v1957_v15  ;;  %v1885_v10 = vadd.f32 %v1855_v7, %v1570_v56  ;;  %v1583_v11 = vpop.f32.mrb[25].mxu0 }
 0x207   : > { %v1856_v19 = vrot.slane %v1583_v11, 1 }
 0x208   : > { %vm1987_vm11 = vcmp.ge.f32.partialorder %v1975_v9, 0.0  ;;  %v1999_v13 = vmul.f32 0.125, %v1975_v9  ;;  %v1958_v12 = vadd.f32 %v4977_v27, %v1885_v10 }
 0x209   : > { %v1587_v14 = vpop.f32.mrb[26].mxu0 }
 0x20a   : > { %v2011_v16 = vsel %vm1987_vm11, %v1975_v9, %v1999_v13  ;;  %v1976_v17 = vadd.f32 %v4997_v59, %v1958_v12  ;;  %v1589_v18 = vpop.f32.mrb[27].mxu0 }
 0x20b   : > { %2035 = vst [vmem:[#allocation3 + $0x49] sm:$0xff] %v2011_v16  ;;  %v1857_v20 = vrot.slane %v1589_v18, 1 }
 0x20c   : > { %vm1988_vm12 = vcmp.ge.f32.partialorder %v1976_v17, 0.0  ;;  %v2000_v26 = vmul.f32 0.125, %v1976_v17 }
 0x20d   : > { %v1858_v21 = vsel %vm1835_vm4, %v1856_v19, %v1857_v20  ;;  %v1593_v22 = vpop.f32.mrb[28].mxu0 }
 0x20e   : > { %v2012_v23 = vsel %vm1988_vm12, %v1976_v17, %v2000_v26  ;;  %v1886_v24 = vadd.f32 %v1858_v21, %v1581_v8  ;;  %v1594_v25 = vpop.f32.mrb[29].mxu0 }
 0x20f   : > { %2036 = vst [vmem:[#allocation3 + $0x51] sm:$0xff] %v2012_v23  ;;  %v1859_v28 = vrot.slane %v1594_v25, 1 }
 0x210   : > { %v1959_v27 = vadd.f32 %v4982_v37, %v1886_v24 }
 0x211   : > { %v1860_v29 = vsel %vm1835_vm4, %v1857_v20, %v1859_v28  ;;  %v1598_v30 = vpop.f32.mrb[30].mxu0 }
 0x212   : > { %v1977_v31 = vadd.f32 %v4997_v59, %v1959_v27  ;;  %v1887_v32 = vadd.f32 %v1860_v29, %v1587_v14  ;;  %v1600_v33 = vpop.f32.mrb[31].mxu0 }
 0x213   : > { %v1861_v43 = vrot.slane %v1600_v33, 1 }
 0x214   : > { %vm1989_vm13 = vcmp.ge.f32.partialorder %v1977_v31, 0.0  ;;  %v2001_v34 = vmul.f32 0.125, %v1977_v31  ;;  %v1960_v38 = vadd.f32 %v4985_v42, %v1887_v32 }
 0x215   : > { %v1604_v39 = vpop.f32.mrb[32].mxu0 }
 0x216   : > { %v2013_v35 = vsel %vm1989_vm13, %v1977_v31, %v2001_v34  ;;  %v1978_v40 = vadd.f32 %v4997_v59, %v1960_v38  ;;  %v1606_v41 = vpop.f32.mrb[33].mxu0 }
 0x217   : > { %2037 = vst [vmem:[#allocation3 + $0x61] sm:$0xff] %v2013_v35  ;;  %v1862_v44 = vrot.slane %v1606_v41, 1 }
 0x218   : > { %vm1990_vm14 = vcmp.ge.f32.partialorder %v1978_v40, 0.0  ;;  %v2002_v37 = vmul.f32 0.125, %v1978_v40 }
 0x219   : > { %v1863_v45 = vsel %vm1835_vm4, %v1861_v43, %v1862_v44  ;;  %v1610_v46 = vpop.f32.mrb[34].mxu0 }
 0x21a   : > { %v2014_v36 = vsel %vm1990_vm14, %v1978_v40, %v2002_v37  ;;  %v1888_v49 = vadd.f32 %v1863_v45, %v1598_v30  ;;  %v1611_v50 = vpop.f32.mrb[35].mxu0 }
 0x21b   : > { %2038 = vst [vmem:[#allocation3 + $0x69] sm:$0xff] %v2014_v36  ;;  %v1864_v51 = vrot.slane %v1611_v50, 1 }
 0x21c   : > { %v1961_v42 = vadd.f32 %v4988_v47, %v1888_v49  ;;  %v4394_v47 = vmov (!%p3371_p0), 0.0  }
 0x21d   : > { %v1865_v52 = vsel %vm1835_vm4, %v1862_v44, %v1864_v51  ;;  %2044 = vst [vmem:[#allocation3 + $0x1] sm:$0xff] (!%p3371_p0), %v4394_v47  ;;  %2045 = vst [vmem:[#allocation3 + $0x9] sm:$0xff] (!%p3371_p0), %v4394_v47 }
 0x21e   : > { %v1979_v53 = vadd.f32 %v4997_v59, %v1961_v42  ;;  %v1889_v54 = vadd.f32 %v1865_v52, %v1604_v39 }
 0x220   : > { %vm1991_vm15 = vcmp.ge.f32.partialorder %v1979_v53, 0.0  ;;  %v2003_v55 = vmul.f32 0.125, %v1979_v53  ;;  %v1962_v56 = vadd.f32 %v4991_v48, %v1889_v54 }
 0x221   : > { %2043 = sbr.rel (%p3371_p0) target bundleno = 552 (0x228), region = 72 }
 0x222   : > { %v2015_v57 = vsel %vm1991_vm15, %v1979_v53, %v2003_v55  ;;  %v1980_v58 = vadd.f32 %v4997_v59, %v1962_v56 }
 0x223   : > { %2039 = vst [vmem:[#allocation3 + $0x79] sm:$0xff] %v2015_v57 }
 0x224   : > { %vm1992_vm0 = vcmp.ge.f32.partialorder %v1980_v58, 0.0  ;;  %v2004_v60 = vmul.f32 0.125, %v1980_v58 }
 0x226   : > { %v2016_v61 = vsel %vm1992_vm0, %v1980_v58, %v2004_v60 }
 0x227   : > { %2040 = vst [vmem:[#allocation3 + $0x81] sm:$0xff] %v2016_v61 }
 0x228 PF: > { %2048 = sbr.rel (%p3373_p2) target bundleno = 559 (0x22f), region = 76  ;;  %v4395_v62 = vmov (!%p3373_p2), 0.0  }
 0x229   : > { %2050 = vst [vmem:[#allocation3 + $0x79] sm:$0xff] (!%p3373_p2), %v4395_v62  ;;  %2051 = vst [vmem:[#allocation3 + $0x81] sm:$0xff] (!%p3373_p2), %v4395_v62 }
 0x22f PF: > { %v2129_v48 = vld [vmem:[#allocation4 + $0x190] sm:$0xff]  ;;  %v2132_v59 = vld [vmem:[#allocation4 + $0x1a8] sm:$0xff]  ;;  %v2135_v3 = vld [vmem:[#allocation4 + $0x1c0] sm:$0xff]  ;;  %2239 = vmatprep.mubr.f32.mxu0 %v4391_v0 }
 0x230   : > { %v3917_v63 = vpack.c.bf16 %v2132_v59, %v2129_v48  ;;  %v2138_v1 = vld [vmem:[#allocation4 + $0x1d8] sm:$0xff]  ;;  %v2141_v4 = vld [vmem:[#allocation4 + $0x1f0] sm:$0xff]  ;;  %v2144_v5 = vld [vmem:[#allocation4 + $0x208] sm:$0xff] }
 0x231   : > { %v3921_v2 = vpack.c.bf16 %v2138_v1, %v2135_v3  ;;  %v3925_v6 = vpack.c.bf16 %v2144_v5, %v2141_v4  ;;  %v5035_v15 = vld [vmem:[#allocation3 + $0x18] sm:$0xff]  ;;  %v2147_v7 = vld [vmem:[#allocation4 + $0x220] sm:$0xff]  ;;  %v2150_v8 = vld [vmem:[#allocation4 + $0x238] sm:$0xff] }
 0x232   : > { %3918 = vmatprep.subr.bf16.mxu1 %v3917_v63  ;;  %3767 = vmatprep.mubr.f32.mxu1 %v5035_v15  ;;  %v3929_v9 = vpack.c.bf16 %v2150_v8, %v2147_v7  ;;  %v2153_v10 = vld [vmem:[#allocation4 + $0x250] sm:$0xff]  ;;  %v2156_v11 = vld [vmem:[#allocation4 + $0x268] sm:$0xff]  ;;  %v2159_v12 = vld [vmem:[#allocation4 + $0x280] sm:$0xff] }
 0x233   : > { %3920 = vmatpush3.bf16.msra.mxu1 %v3917_v63  ;;  %v3933_v13 = vpack.c.bf16 %v2156_v11, %v2153_v10  ;;  %v2162_v14 = vld [vmem:[#allocation4 + $0x298] sm:$0xff]  ;;  %v2165_v17 = vld [vmem:[#allocation4 + $0x2b0] sm:$0xff]  ;;  %v2168_v18 = vld [vmem:[#allocation4 + $0x2c8] sm:$0xff] }
 0x234   : > { %3922 = vmatprep.subr.bf16.mxu1 %v3921_v2  ;;  %v3937_v16 = vpack.c.bf16 %v2162_v14, %v2159_v12  ;;  %v3941_v19 = vpack.c.bf16 %v2168_v18, %v2165_v17  ;;  %v2171_v20 = vld [vmem:[#allocation4 + $0x2e0] sm:$0xff]  ;;  %v2174_v26 = vld [vmem:[#allocation4 + $0x2f8] sm:$0xff]  ;;  %v2066_v22 = vld [vmem:[#allocation4 + $0x8] sm:$0xff] }
 0x235   : > { %v3945_v21 = vpack.c.bf16 %v2174_v26, %v2171_v20  ;;  %v2069_v23 = vld [vmem:[#allocation4 + $0x20] sm:$0xff]  ;;  %v2128_v24 = vld [vmem:[#allocation4 + $0x188] sm:$0xff]  ;;  %v2068_v30 = vld [vmem:[#allocation4 + $0x18] sm:$0xff] }
 0x236   : > { %v2131_v25 = vld [vmem:[#allocation4 + $0x1a0] sm:$0xff]  ;;  %v2130_v31 = vld [vmem:[#allocation4 + $0x198] sm:$0xff]  ;;  %v3949_v32 = vpack.c.bf16 %v2069_v23, %v2066_v22  ;;  %v2137_v39 = vld [vmem:[#allocation4 + $0x1d0] sm:$0xff] }
 0x237   : > { %3924 = vmatpush3.bf16.msra.mxu1 %v3921_v2  ;;  %v3885_v28 = vpack.c.bf16 %v2131_v25, %v2128_v24  ;;  %v2127_v27 = vld [vmem:[#allocation4 + $0x180] sm:$0xff]  ;;  %v2072_v33 = vld [vmem:[#allocation4 + $0x38] sm:$0xff]  ;;  %v2075_v35 = vld [vmem:[#allocation4 + $0x50] sm:$0xff] }
 0x238   : > { %3926 = vmatprep.subr.bf16.mxu1 %v3925_v6  ;;  %v2065_v29 = vld [vmem:[#allocation4] sm:$0xff]  ;;  %v3887_v34 = vpack.c.bf16 %v2130_v31, %v2127_v27  ;;  %v2134_v38 = vld [vmem:[#allocation4 + $0x1b8] sm:$0xff]  ;;  %v2133_v41 = vld [vmem:[#allocation4 + $0x1b0] sm:$0xff]  ;;  %v3953_v42 = vpack.c.bf16 %v2075_v35, %v2072_v33 }
 0x239   : > { %3886 = vmatprep.subr.bf16.mxu0 %v3885_v28  ;;  %v3889_v40 = vpack.c.bf16 %v2137_v39, %v2134_v38  ;;  %v2136_v43 = vld [vmem:[#allocation4 + $0x1c8] sm:$0xff]  ;;  %v5038_v44 = vld [vmem:[#allocation3 + $0x20] sm:$0xff]  ;;  %v3951_v36 = vpack.c.bf16 %v2068_v30, %v2065_v29  ;;  %v2143_v51 = vld [vmem:[#allocation4 + $0x200] sm:$0xff] }
 0x23a   : > { %v2071_v37 = vld [vmem:[#allocation4 + $0x30] sm:$0xff]  ;;  %3888 = vmatpush1.bf16.msra.mxu0 %v3887_v34  ;;  %v3891_v45 = vpack.c.bf16 %v2136_v43, %v2133_v41  ;;  %v2140_v46 = vld [vmem:[#allocation4 + $0x1e8] sm:$0xff]  ;;  %v5040_v52 = vld [vmem:[#allocation3 + $0x28] sm:$0xff] }
 0x23b   : > { %3928 = vmatpush3.bf16.msra.mxu1 %v3925_v6  ;;  %v2074_v49 = vld [vmem:[#allocation4 + $0x48] sm:$0xff]  ;;  %3890 = vmatprep.subr.bf16.mxu0 %v3889_v40  ;;  %v3893_v53 = vpack.c.bf16 %v2143_v51, %v2140_v46  ;;  %v2139_v54 = vld [vmem:[#allocation4 + $0x1e0] sm:$0xff]  ;;  %v2142_v55 = vld [vmem:[#allocation4 + $0x1f8] sm:$0xff] }
 0x23c   : > { %3930 = vmatprep.subr.bf16.mxu1 %v3929_v9  ;;  %v2078_v50 = vld [vmem:[#allocation4 + $0x68] sm:$0xff]  ;;  %v2081_v56 = vld [vmem:[#allocation4 + $0x80] sm:$0xff]  ;;  %v2146_v57 = vld [vmem:[#allocation4 + $0x218] sm:$0xff]  ;;  %v3895_v61 = vpack.c.bf16 %v2142_v55, %v2139_v54  ;;  %v3955_v47 = vpack.c.bf16 %v2074_v49, %v2071_v37 }
 0x23d   : > { %v2149_v58 = vld [vmem:[#allocation4 + $0x230] sm:$0xff]  ;;  %v2077_v60 = vld [vmem:[#allocation4 + $0x60] sm:$0xff]  ;;  %v2148_v59 = vld [vmem:[#allocation4 + $0x228] sm:$0xff]  ;;  %v3957_v3 = vpack.c.bf16 %v2081_v56, %v2078_v50 }
 0x23e   : > { %3892 = vmatpush1.bf16.msra.mxu0 %v3891_v45  ;;  %v5044_v62 = vld [vmem:[#allocation3 + $0x30] sm:$0xff]  ;;  %v2145_v48 = vld [vmem:[#allocation4 + $0x210] sm:$0xff]  ;;  %v2080_v63 = vld [vmem:[#allocation4 + $0x78] sm:$0xff]  ;;  %v3897_v4 = vpack.c.bf16 %v2149_v58, %v2146_v57 }
 0x23f   : > { %3932 = vmatpush3.bf16.msra.mxu1 %v3929_v9  ;;  %v2084_v1 = vld [vmem:[#allocation4 + $0x98] sm:$0xff]  ;;  %v5046_v2 = vld [vmem:[#allocation3 + $0x38] sm:$0xff]  ;;  %3894 = vmatprep.subr.bf16.mxu0 %v3893_v53  ;;  %v2087_v5 = vld [vmem:[#allocation4 + $0xb0] sm:$0xff]  ;;  %v3899_v9 = vpack.c.bf16 %v2148_v59, %v2145_v48  ;;  %v3959_v10 = vpack.c.bf16 %v2080_v63, %v2077_v60 }
 0x240   : > { %3934 = vmatprep.subr.bf16.mxu1 %v3933_v13  ;;  %v2152_v6 = vld [vmem:[#allocation4 + $0x248] sm:$0xff]  ;;  %v2155_v7 = vld [vmem:[#allocation4 + $0x260] sm:$0xff]  ;;  %v2083_v8 = vld [vmem:[#allocation4 + $0x90] sm:$0xff]  ;;  %v3961_v14 = vpack.c.bf16 %v2087_v5, %v2084_v1 }
 0x241   : > { %v5050_v11 = vld [vmem:[#allocation3 + $0x40] sm:$0xff]  ;;  %v2154_v12 = vld [vmem:[#allocation4 + $0x258] sm:$0xff]  ;;  %v2090_v17 = vld [vmem:[#allocation4 + $0xc8] sm:$0xff] }
 0x242   : > { %3896 = vmatpush1.bf16.msra.mxu0 %v3895_v61  ;;  %v5052_v18 = vld [vmem:[#allocation3 + $0x48] sm:$0xff]  ;;  %v2093_v20 = vld [vmem:[#allocation4 + $0xe0] sm:$0xff]  ;;  %v2157_v28 = vld [vmem:[#allocation4 + $0x270] sm:$0xff] }
 0x243   : > { %3936 = vmatpush3.bf16.msra.mxu1 %v3933_v13  ;;  %v2151_v13 = vld [vmem:[#allocation4 + $0x240] sm:$0xff]  ;;  %3898 = vmatprep.subr.bf16.mxu0 %v3897_v4  ;;  %v2158_v26 = vld [vmem:[#allocation4 + $0x278] sm:$0xff]  ;;  %v2160_v27 = vld [vmem:[#allocation4 + $0x288] sm:$0xff]  ;;  %v3965_v29 = vpack.c.bf16 %v2093_v20, %v2090_v17 }
 0x244   : > { %3938 = vmatprep.subr.bf16.mxu1 %v3937_v16  ;;  %v2089_v22 = vld [vmem:[#allocation4 + $0xc0] sm:$0xff]  ;;  %v3903_v23 = vpack.c.bf16 %v2154_v12, %v2151_v13  ;;  %v2092_v30 = vld [vmem:[#allocation4 + $0xd8] sm:$0xff]  ;;  %v2099_v34 = vld [vmem:[#allocation4 + $0x110] sm:$0xff]  ;;  %v3907_v40 = vpack.c.bf16 %v2160_v27, %v2157_v28 }
 0x245   : > { %v5056_v25 = vld [vmem:[#allocation3 + $0x50] sm:$0xff]  ;;  %v2096_v31 = vld [vmem:[#allocation4 + $0xf8] sm:$0xff]  ;;  %v2164_v38 = vld [vmem:[#allocation4 + $0x2a8] sm:$0xff]  ;;  %v3967_v41 = vpack.c.bf16 %v2092_v30, %v2089_v22 }
 0x246   : > { %3900 = vmatpush1.bf16.msra.mxu0 %v3899_v9  ;;  %v2167_v39 = vld [vmem:[#allocation4 + $0x2c0] sm:$0xff]  ;;  %v2095_v35 = vld [vmem:[#allocation4 + $0xf0] sm:$0xff]  ;;  %v2166_v45 = vld [vmem:[#allocation4 + $0x2b8] sm:$0xff]  ;;  %v3969_v46 = vpack.c.bf16 %v2099_v34, %v2096_v31 }
 0x247   : > { %3940 = vmatpush3.bf16.msra.mxu1 %v3937_v16  ;;  %v2086_v16 = vld [vmem:[#allocation4 + $0xa8] sm:$0xff]  ;;  %v5062_v43 = vld [vmem:[#allocation3 + $0x60] sm:$0xff]  ;;  %v2163_v37 = vld [vmem:[#allocation4 + $0x2a0] sm:$0xff]  ;;  %v3909_v51 = vpack.c.bf16 %v2167_v39, %v2164_v38 }
 0x248   : > { %3942 = vmatprep.subr.bf16.mxu1 %v3941_v19  ;;  %v3963_v24 = vpack.c.bf16 %v2086_v16, %v2083_v8  ;;  %v2102_v49 = vld [vmem:[#allocation4 + $0x128] sm:$0xff]  ;;  %v5064_v50 = vld [vmem:[#allocation3 + $0x68] sm:$0xff]  ;;  %v2173_v54 = vld [vmem:[#allocation4 + $0x2f0] sm:$0xff]  ;;  %v3911_v55 = vpack.c.bf16 %v2166_v45, %v2163_v37 }
 0x249   : > { %v2170_v53 = vld [vmem:[#allocation4 + $0x2d8] sm:$0xff]  ;;  %v5068_v57 = vld [vmem:[#allocation3 + $0x70] sm:$0xff]  ;;  %v2169_v58 = vld [vmem:[#allocation4 + $0x2d0] sm:$0xff] }
 0x24a   : > { %v2172_v60 = vld [vmem:[#allocation4 + $0x2e8] sm:$0xff]  ;;  %v2104_v48 = vld [vmem:[#allocation4 + $0x138] sm:$0xff]  ;;  %v3913_v59 = vpack.c.bf16 %v2173_v54, %v2170_v53  ;;  %v2111_v63 = vld [vmem:[#allocation4 + $0x170] sm:$0xff] }
 0x24b   : > { %3944 = vmatpush3.bf16.msra.mxu1 %v3941_v19  ;;  %v3901_v19 = vpack.c.bf16 %v2155_v7, %v2152_v6  ;;  %v3915_v1 = vpack.c.bf16 %v2172_v60, %v2169_v58  ;;  %v2107_v6 = vld [vmem:[#allocation4 + $0x150] sm:$0xff]  ;;  %v2110_v7 = vld [vmem:[#allocation4 + $0x168] sm:$0xff]  ;;  %v2073_v12 = vld [vmem:[#allocation4 + $0x40] sm:$0xff] }
 0x24c   : > { %3946 = vmatprep.subr.bf16.mxu1 %v3945_v21  ;;  %v2067_v8 = vld [vmem:[#allocation4 + $0x10] sm:$0xff]  ;;  %v2070_v9 = vld [vmem:[#allocation4 + $0x28] sm:$0xff]  ;;  %v2085_v22 = vld [vmem:[#allocation4 + $0xa0] sm:$0xff] }
 0x24d   : > { %3902 = vmatprep.subr.bf16.mxu0 %v3901_v19  ;;  %v3981_v13 = vpack.c.bf16 %v2070_v9, %v2067_v8  ;;  %v5074_v16 = vld [vmem:[#allocation3] sm:$0xff]  ;;  %v2082_v20 = vld [vmem:[#allocation4 + $0x88] sm:$0xff]  ;;  %v2097_v31 = vld [vmem:[#allocation4 + $0x100] sm:$0xff] }
 0x24e   : > { %3904 = vmatpush1.bf16.msra.mxu0 %v3903_v23  ;;  %v2079_v19 = vld [vmem:[#allocation4 + $0x70] sm:$0xff]  ;;  %v2088_v23 = vld [vmem:[#allocation4 + $0xb8] sm:$0xff]  ;;  %v2106_v39 = vld [vmem:[#allocation4 + $0x148] sm:$0xff] }
 0x24f   : > { %3948 = vmatpush3.bf16.msra.mxu1 %v3945_v21  ;;  %v2161_v21 = vld [vmem:[#allocation4 + $0x290] sm:$0xff]  ;;  %v3993_v28 = vpack.c.bf16 %v2088_v23, %v2085_v22  ;;  %v2706_v45 = vld [vmem:[#allocation4 + $0x308] sm:$0xff]  ;;  %v2733_v9 = vld [vmem:[#allocation4 + $0x3e0] sm:$0xff] }
 0x250   : > { %3950 = vmatprep.subr.bf16.mxu1 %v3949_v32  ;;  %v5058_v32 = vld [vmem:[#allocation3 + $0x58] sm:$0xff]  ;;  %v3905_v33 = vpack.c.bf16 %v2161_v21, %v2158_v26  ;;  %v5080_v26 = vld [vmem:[#allocation3 + $0x8] sm:$0xff]  ;;  %v3989_v21 = vpack.c.bf16 %v2082_v20, %v2079_v19  ;;  %v2091_v27 = vld [vmem:[#allocation4 + $0xd0] sm:$0xff] }
 0x251   : > { %v2103_v38 = vld [vmem:[#allocation4 + $0x130] sm:$0xff]  ;;  %v2714_v58 = vld [vmem:[#allocation4 + $0x348] sm:$0xff]  ;;  %v2741_v23 = vld [vmem:[#allocation4 + $0x420] sm:$0xff] }
 0x252   : > { %3768 = vmatmul.mubr.f32.vlgmr.msra.gmra.mrb[18].mxu1 %v5038_v44  ;;  %3906 = vmatprep.subr.bf16.mxu0 %v3905_v33  ;;  %v2100_v33 = vld [vmem:[#allocation4 + $0x118] sm:$0xff]  ;;  %v2715_v53 = vld [vmem:[#allocation4 + $0x350] sm:$0xff]  ;;  %v2718_v60 = vld [vmem:[#allocation4 + $0x368] sm:$0xff] }
 0x253   : > { %3952 = vmatpush1.bf16.msra.mxu1 %v3951_v36  ;;  %3770 = vmatprep.mubr.f32.mxu1 %v5040_v52  ;;  %v2098_v36 = vld [vmem:[#allocation4 + $0x108] sm:$0xff]  ;;  %v4001_v34 = vpack.c.bf16 %v2100_v33, %v2097_v31  ;;  %v2735_v19 = vld [vmem:[#allocation4 + $0x3f0] sm:$0xff] }
 0x254   : > { %3954 = vmatprep.subr.bf16.mxu1 %v3953_v42  ;;  %v2105_v42 = vld [vmem:[#allocation4 + $0x140] sm:$0xff]  ;;  %3908 = vmatpush1.bf16.msra.mxu0 %v3907_v40  ;;  %v3971_v56 = vpack.c.bf16 %v2098_v36, %v2095_v35  ;;  %v4005_v35 = vpack.c.bf16 %v2106_v39, %v2103_v38  ;;  %v2730_v8 = vld [vmem:[#allocation4 + $0x3c8] sm:$0xff]  ;;  %v2747_v31 = vld [vmem:[#allocation4 + $0x450] sm:$0xff] }
 0x255   : > { %v3973_v61 = vpack.c.bf16 %v2105_v42, %v2102_v49  ;;  %3910 = vmatprep.subr.bf16.mxu0 %v3909_v51  ;;  %v2109_v40 = vld [vmem:[#allocation4 + $0x160] sm:$0xff]  ;;  %v2708_v51 = vld [vmem:[#allocation4 + $0x318] sm:$0xff]  ;;  %v2742_v20 = vld [vmem:[#allocation4 + $0x428] sm:$0xff] }
 0x256   : > { %3771 = vmatmul.mubr.f32.gmra.mrb[20].mxu1 %v5044_v62  ;;  %v2705_v49 = vld [vmem:[#allocation4 + $0x300] sm:$0xff]  ;;  %v2712_v42 = vld [vmem:[#allocation4 + $0x338] sm:$0xff]  ;;  %v2750_v33 = vld [vmem:[#allocation4 + $0x468] sm:$0xff] }
 0x257   : > { %3956 = vmatpush1.bf16.msra.mxu1 %v3955_v47  ;;  %3773 = vmatprep.mubr.f32.mxu1 %v5046_v2  ;;  %v2101_v47 = vld [vmem:[#allocation4 + $0x120] sm:$0xff]  ;;  %v4015_v54 = vpack.c.bf16 %v2708_v51, %v2705_v49  ;;  %v2710_v38 = vld [vmem:[#allocation4 + $0x328] sm:$0xff]  ;;  %v4043_v39 = vpack.c.bf16 %v2750_v33, %v2747_v31  ;;  %v2728_v51 = vld [vmem:[#allocation4 + $0x3b8] sm:$0xff] }
 0x258   : > { %3958 = vmatprep.subr.bf16.mxu1 %v3957_v3  ;;  %v2108_v3 = vld [vmem:[#allocation4 + $0x158] sm:$0xff]  ;;  %3912 = vmatpush1.bf16.msra.mxu0 %v3911_v55  ;;  %v3975_v4 = vpack.c.bf16 %v2104_v48, %v2101_v47  ;;  %v4017_v55 = vpack.c.bf16 %v2715_v53, %v2712_v42  ;;  %v2725_v49 = vld [vmem:[#allocation4 + $0x3a0] sm:$0xff]  ;;  %v2731_v53 = vld [vmem:[#allocation4 + $0x3d0] sm:$0xff] }
 0x259   : > { %v3977_v5 = vpack.c.bf16 %v2111_v63, %v2108_v3  ;;  %3914 = vmatprep.subr.bf16.mxu0 %v3913_v59  ;;  %v2717_v59 = vld [vmem:[#allocation4 + $0x360] sm:$0xff]  ;;  %v2720_v3 = vld [vmem:[#allocation4 + $0x378] sm:$0xff]  ;;  %v4057_v42 = vpack.c.bf16 %v2728_v51, %v2725_v49 }
 0x25a   : > { %3774 = vmatmul.mubr.f32.gmra.mrb[22].mxu1 %v5050_v11  ;;  %v2724_v63 = vld [vmem:[#allocation4 + $0x398] sm:$0xff] }
 0x25b   : > { %3960 = vmatpush1.bf16.msra.mxu1 %v3959_v10  ;;  %3776 = vmatprep.mubr.f32.mxu1 %v5052_v18  ;;  %v3979_v10 = vpack.c.bf16 %v2110_v7, %v2107_v6  ;;  %v2723_v6 = vld [vmem:[#allocation4 + $0x390] sm:$0xff]  ;;  %v2726_v7 = vld [vmem:[#allocation4 + $0x3a8] sm:$0xff] }
 0x25c   : > { %3962 = vmatprep.subr.bf16.mxu1 %v3961_v14  ;;  %3916 = vmatpush1.bf16.msra.mxu0 %v3915_v1  ;;  %v2076_v14 = vld [vmem:[#allocation4 + $0x58] sm:$0xff]  ;;  %v2727_v1 = vld [vmem:[#allocation4 + $0x3b0] sm:$0xff] }
 0x25d   : > { %v3985_v17 = vpack.c.bf16 %v2076_v14, %v2073_v12  ;;  %v2729_v12 = vld [vmem:[#allocation4 + $0x3c0] sm:$0xff]  ;;  %v2736_v14 = vld [vmem:[#allocation4 + $0x3f8] sm:$0xff] }
 0x25e   : > { %3777 = vmatmul.mubr.f32.gmra.mrb[24].mxu1 %v5056_v25 }
 0x25f   : > { %3964 = vmatpush1.bf16.msra.mxu1 %v3963_v24  ;;  %3779 = vmatprep.mubr.f32.mxu1 %v5058_v32  ;;  %v5086_v24 = vld [vmem:[#allocation3 + $0x10] sm:$0xff] }
 0x260   : > { %3966 = vmatprep.subr.bf16.mxu1 %v3965_v29  ;;  %2240 = vmatmul.mubr.f32.vlgmr.msra.gmra.mrb[42].mxu0 %v5035_v15  ;;  %v2094_v29 = vld [vmem:[#allocation4 + $0xe8] sm:$0xff] }
 0x261   : > { %2245 = vmatprep.mubr.f32.mxu0 %v4391_v0  ;;  %v3997_v30 = vpack.c.bf16 %v2094_v29, %v2091_v27  ;;  %v2751_v27 = vld [vmem:[#allocation4 + $0x470] sm:$0xff] }
 0x262   : > { %3780 = vmatmul.mubr.f32.gmra.mrb[26].mxu1 %v5062_v43 }
 0x263   : > { %3968 = vmatpush1.bf16.msra.mxu1 %v3967_v41  ;;  %3782 = vmatprep.mubr.f32.mxu1 %v5064_v50  ;;  %v2112_v41 = vld [vmem:[#allocation4 + $0x178] sm:$0xff] }
 0x264   : > { %3970 = vmatprep.subr.bf16.mxu1 %v3969_v46  ;;  %2246 = vmatmul.mubr.f32.gmra.mrb[44].mxu0 %v5038_v44  ;;  %v4009_v37 = vpack.c.bf16 %v2112_v41, %v2109_v40  ;;  %v2709_v46 = vld [vmem:[#allocation4 + $0x320] sm:$0xff]  ;;  %v2716_v41 = vld [vmem:[#allocation4 + $0x358] sm:$0xff] }
 0x265   : > { %2251 = vmatprep.mubr.f32.mxu0 %v4391_v0  ;;  %v4013_v36 = vpack.c.bf16 %v2709_v46, %v2706_v45  ;;  %v2713_v40 = vld [vmem:[#allocation4 + $0x340] sm:$0xff]  ;;  %v2719_v45 = vld [vmem:[#allocation4 + $0x370] sm:$0xff]  ;;  %v2722_v46 = vld [vmem:[#allocation4 + $0x388] sm:$0xff] }
 0x266   : > { %3783 = vmatmul.mubr.f32.gmra.mrb[28].mxu1 %v5068_v57 }
 0x267   : > { %3972 = vmatpush1.bf16.msra.mxu1 %v3971_v56  ;;  %2497 = vmatprep.mubr.f32.mxu1 %v4391_v0  ;;  %v2711_v56 = vld [vmem:[#allocation4 + $0x330] sm:$0xff] }
 0x268   : > { %3974 = vmatprep.subr.bf16.mxu1 %v3973_v61  ;;  %2252 = vmatmul.mubr.f32.gmra.mrb[46].mxu0 %v5040_v52  ;;  %v2721_v61 = vld [vmem:[#allocation4 + $0x380] sm:$0xff]  ;;  %v4019_v47 = vpack.c.bf16 %v2714_v58, %v2711_v56  ;;  %v2740_v58 = vld [vmem:[#allocation4 + $0x418] sm:$0xff] }
 0x269   : > { %2256 = vmatprep.mubr.f32.mxu0 %v4391_v0  ;;  %v4021_v48 = vpack.c.bf16 %v2721_v61, %v2718_v60  ;;  %v2737_v56 = vld [vmem:[#allocation4 + $0x400] sm:$0xff]  ;;  %v2743_v61 = vld [vmem:[#allocation4 + $0x430] sm:$0xff] }
 0x26a   : > { %v4065_v60 = vpack.c.bf16 %v2740_v58, %v2737_v56 }
 0x26b   : > { %3976 = vmatpush1.bf16.msra.mxu1 %v3975_v4  ;;  %v4023_v4 = vpack.c.bf16 %v2720_v3, %v2717_v59  ;;  %v2749_v59 = vld [vmem:[#allocation4 + $0x460] sm:$0xff]  ;;  %v2752_v3 = vld [vmem:[#allocation4 + $0x478] sm:$0xff] }
 0x26c   : > { %3978 = vmatprep.subr.bf16.mxu1 %v3977_v5  ;;  %2257 = vmatmul.mubr.f32.gmra.mrb[48].mxu0 %v5044_v62  ;;  %v4025_v5 = vpack.c.bf16 %v2727_v1, %v2724_v63  ;;  %v4073_v63 = vpack.c.bf16 %v2752_v3, %v2749_v59  ;;  %v2701_v1 = vld [vmem:[#allocation3 + $0x78] sm:$0xff] }
 0x26d   : > { %2262 = vmatprep.mubr.f32.mxu0 %v4391_v0 }
 0x26f   : > { %3980 = vmatpush1.bf16.msra.mxu1 %v3979_v10  ;;  %v4027_v10 = vpack.c.bf16 %v2726_v7, %v2723_v6 }
 0x270   : > { %3982 = vmatprep.subr.bf16.mxu1 %v3981_v13  ;;  %2263 = vmatmul.mubr.f32.gmra.mrb[50].mxu0 %v5046_v2 }
 0x271   : > { %2268 = vmatprep.mubr.f32.mxu0 %v4391_v0 }
 0x272   : > { %2498 = vmatmul.mubr.f32.vlgmr.msra.gmra.mrb[30].mxu1 %v5074_v16 }
 0x273   : > { %3984 = vmatpush3.bf16.msra.mxu1 %v3981_v13  ;;  %2503 = vmatprep.mubr.f32.mxu1 %v4391_v0  ;;  %v4029_v13 = vpack.c.bf16 %v2733_v9, %v2730_v8 }
 0x274   : > { %3986 = vmatprep.subr.bf16.mxu1 %v3985_v17  ;;  %2269 = vmatmul.mubr.f32.gmra.mrb[52].mxu0 %v5050_v11 }
 0x275   : > { %2273 = vmatprep.mubr.f32.mxu0 %v4391_v0 }
 0x276   : > { %2504 = vmatmul.mubr.f32.gmra.mrb[32].mxu1 %v5080_v26 }
 0x277   : > { %2509 = vmatprep.mubr.f32.mxu1 %v4391_v0  ;;  %3988 = vmatpush3.bf16.msra.mxu1 %v3985_v17 }
 0x278   : > { %3990 = vmatprep.subr.bf16.mxu1 %v3989_v21  ;;  %2274 = vmatmul.mubr.f32.gmra.mrb[54].mxu0 %v5052_v18 }
 0x279   : > { %2279 = vmatprep.mubr.f32.mxu0 %v4391_v0 }
 0x27a   : > { %2510 = vmatmul.mubr.f32.gmra.mrb[34].mxu1 %v5086_v24 }
 0x27b   : > { %2514 = vmatprep.mubr.f32.mxu1 %v4391_v0  ;;  %3992 = vmatpush3.bf16.msra.mxu1 %v3989_v21 }
 0x27c   : > { %3994 = vmatprep.subr.bf16.mxu1 %v3993_v28  ;;  %2280 = vmatmul.mubr.f32.gmra.mrb[56].mxu0 %v5056_v25 }
 0x27d   : > { %2285 = vmatprep.mubr.f32.mxu0 %v4391_v0 }
 0x27e   : > { %2515 = vmatmul.mubr.f32.gmra.mrb[36].mxu1 %v5035_v15 }
 0x27f   : > { %2520 = vmatprep.mubr.f32.mxu1 %v4391_v0  ;;  %3996 = vmatpush3.bf16.msra.mxu1 %v3993_v28  ;;  %v2748_v28 = vld [vmem:[#allocation4 + $0x458] sm:$0xff] }
 0x280   : > { %3998 = vmatprep.subr.bf16.mxu1 %v3997_v30  ;;  %2286 = vmatmul.mubr.f32.gmra.mrb[58].mxu0 %v5058_v32 }
 0x281   : > { %2290 = vmatprep.mubr.f32.mxu0 %v4391_v0 }
 0x282   : > { %2521 = vmatmul.mubr.f32.gmra.mrb[38].mxu1 %v5038_v44 }
 0x283   : > { %2526 = vmatprep.mubr.f32.mxu1 %v4391_v0  ;;  %4000 = vmatpush3.bf16.msra.mxu1 %v3997_v30  ;;  %v4041_v30 = vpack.c.bf16 %v2751_v27, %v2748_v28 }
 0x284   : > { %4002 = vmatprep.subr.bf16.mxu1 %v4001_v34  ;;  %2291 = vmatmul.mubr.f32.gmra.mrb[60].mxu0 %v5062_v43 }
 0x285   : > { %2296 = vmatprep.mubr.f32.mxu0 %v4391_v0 }
 0x286   : > { %2527 = vmatmul.mubr.f32.gmra.mrb[40].mxu1 %v5040_v52 }
 0x287   : > { %2531 = vmatprep.mubr.f32.mxu1 %v4391_v0  ;;  %4004 = vmatpush3.bf16.msra.mxu1 %v4001_v34  ;;  %v2707_v34 = vld [vmem:[#allocation4 + $0x310] sm:$0xff] }
 0x288   : > { %4006 = vmatprep.subr.bf16.mxu1 %v4005_v35  ;;  %2297 = vmatmul.mubr.f32.gmra.mrb[62].mxu0 %v5064_v50 }
 0x289   : > { %2302 = vmatprep.mubr.f32.mxu0 %v4391_v0 }
 0x28a   : > { %2532 = vmatmul.mubr.f32.gmra.mrb[42].mxu1 %v5044_v62 }
 0x28b   : > { %2537 = vmatprep.mubr.f32.mxu1 %v4391_v0  ;;  %4008 = vmatpush3.bf16.msra.mxu1 %v4005_v35  ;;  %v4045_v35 = vpack.c.bf16 %v2710_v38, %v2707_v34 }
 0x28c   : > { %4010 = vmatprep.subr.bf16.mxu1 %v4009_v37  ;;  %2303 = vmatmul.mubr.f32.gmra.mrb[64].mxu0 %v5068_v57 }
 0x28e   : > { %2538 = vmatmul.mubr.f32.gmra.mrb[44].mxu1 %v5046_v2 }
 0x28f   : > { %2543 = vmatprep.mubr.f32.mxu1 %v4391_v0  ;;  %4012 = vmatpush3.bf16.msra.mxu1 %v4009_v37  ;;  %v4049_v37 = vpack.c.bf16 %v2716_v41, %v2713_v40 }
 0x290   : > { %4014 = vmatprep.subr.bf16.mxu1 %v4013_v36  ;;  %v4053_v36 = vpack.c.bf16 %v2722_v46, %v2719_v45 }
 0x292   : > { %2544 = vmatmul.mubr.f32.gmra.mrb[46].mxu1 %v5050_v11 }
 0x293   : > { %2548 = vmatprep.mubr.f32.mxu1 %v4391_v0 }
 0x296   : > { %2549 = vmatmul.mubr.f32.gmra.mrb[48].mxu1 %v5052_v18 }
 0x297   : > { %2554 = vmatprep.mubr.f32.mxu1 %v4391_v0 }
 0x29a   : > { %2555 = vmatmul.mubr.f32.gmra.mrb[50].mxu1 %v5056_v25 }
 0x29b   : > { %2560 = vmatprep.mubr.f32.mxu1 %v4391_v0 }
 0x29e   : > { %2561 = vmatmul.mubr.f32.gmra.mrb[52].mxu1 %v5058_v32 }
 0x29f   : > { %3817 = vmatprep.mubr.f32.mxu1 %v5074_v16  ;;  %v2739_v16 = vld [vmem:[#allocation4 + $0x410] sm:$0xff] }
 0x2a0   : > { %v4033_v17 = vpack.c.bf16 %v2739_v16, %v2736_v14 }
 0x2a2   : > { %3818 = vmatmul.mubr.f32.vlgmr.msra.gmra.mrb[18].mxu1 %v5080_v26  ;;  %v2745_v26 = vld [vmem:[#allocation4 + $0x440] sm:$0xff] }
 0x2a3   : > { %4016 = vmatpush1.bf16.msra.mxu1 %v4015_v54  ;;  %3820 = vmatprep.mubr.f32.mxu1 %v5086_v24  ;;  %v4037_v22 = vpack.c.bf16 %v2745_v26, %v2742_v20  ;;  %v2744_v24 = vld [vmem:[#allocation4 + $0x438] sm:$0xff]  ;;  %v2734_v54 = vld [vmem:[#allocation4 + $0x3e8] sm:$0xff] }
 0x2a4   : > { %4018 = vmatprep.subr.bf16.mxu1 %v4017_v55  ;;  %v4039_v29 = vpack.c.bf16 %v2744_v24, %v2741_v23  ;;  %v4061_v55 = vpack.c.bf16 %v2734_v54, %v2731_v53 }
 0x2a6   : > { %3821 = vmatmul.mubr.f32.gmra.mrb[20].mxu1 %v5035_v15  ;;  %v2732_v15 = vld [vmem:[#allocation4 + $0x3d8] sm:$0xff] }
 0x2a7   : > { %4020 = vmatpush1.bf16.msra.mxu1 %v4019_v47  ;;  %3823 = vmatprep.mubr.f32.mxu1 %v5038_v44  ;;  %v4031_v44 = vpack.c.bf16 %v2732_v15, %v2729_v12  ;;  %v2746_v47 = vld [vmem:[#allocation4 + $0x448] sm:$0xff] }
 0x2a8   : > { %4022 = vmatprep.subr.bf16.mxu1 %v4021_v48  ;;  %v4069_v48 = vpack.c.bf16 %v2746_v47, %v2743_v61 }
 0x2aa   : > { %3824 = vmatmul.mubr.f32.gmra.mrb[22].mxu1 %v5040_v52  ;;  %v2738_v52 = vld [vmem:[#allocation4 + $0x408] sm:$0xff] }
 0x2ab   : > { %4024 = vmatpush1.bf16.msra.mxu1 %v4023_v4  ;;  %3826 = vmatprep.mubr.f32.mxu1 %v5044_v62  ;;  %v4035_v21 = vpack.c.bf16 %v2738_v52, %v2735_v19  ;;  %v2702_v4 = vld [vmem:[#allocation3 + $0x80] sm:$0xff] }
 0x2ac   : > { %4026 = vmatprep.subr.bf16.mxu1 %v4025_v5  ;;  %v2703_v5 = vld [vmem:[#allocation3 + $0x88] sm:$0xff] }
 0x2ae   : > { %3827 = vmatmul.mubr.f32.gmra.mrb[24].mxu1 %v5046_v2 }
 0x2af   : > { %4028 = vmatpush1.bf16.msra.mxu1 %v4027_v10  ;;  %3829 = vmatprep.mubr.f32.mxu1 %v5050_v11 }
 0x2b0   : > { %4030 = vmatprep.subr.bf16.mxu1 %v4029_v13 }
 0x2b2   : > { %3830 = vmatmul.mubr.f32.gmra.mrb[26].mxu1 %v5052_v18 }
 0x2b3   : > { %4032 = vmatpush1.bf16.msra.mxu1 %v4031_v44  ;;  %3832 = vmatprep.mubr.f32.mxu1 %v5056_v25 }
 0x2b4   : > { %4034 = vmatprep.subr.bf16.mxu1 %v4033_v17 }
 0x2b6   : > { %3833 = vmatmul.mubr.f32.gmra.mrb[28].mxu1 %v5058_v32 }
 0x2b7   : > { %4036 = vmatpush1.bf16.msra.mxu1 %v4035_v21  ;;  %2817 = vmatprep.mubr.f32.mxu1 %v4391_v0 }
 0x2b8   : > { %4038 = vmatprep.subr.bf16.mxu1 %v4037_v22 }
 0x2bb   : > { %4040 = vmatpush1.bf16.msra.mxu1 %v4039_v29 }
 0x2bc   : > { %4042 = vmatprep.subr.bf16.mxu1 %v4041_v30 }
 0x2bf   : > { %4044 = vmatpush1.bf16.msra.mxu1 %v4043_v39 }
 0x2c0   : > { %4046 = vmatprep.subr.bf16.mxu1 %v4045_v35 }
 0x2c2   : > { %2818 = vmatmul.mubr.f32.vlgmr.msra.gmra.mrb[30].mxu1 %v5044_v62 }
 0x2c3   : > { %4048 = vmatpush3.bf16.msra.mxu1 %v4045_v35  ;;  %2823 = vmatprep.mubr.f32.mxu1 %v4391_v0 }
 0x2c4   : > { %4050 = vmatprep.subr.bf16.mxu1 %v4049_v37 }
 0x2c6   : > { %2824 = vmatmul.mubr.f32.gmra.mrb[32].mxu1 %v5046_v2 }
 0x2c7   : > { %2829 = vmatprep.mubr.f32.mxu1 %v4391_v0  ;;  %4052 = vmatpush3.bf16.msra.mxu1 %v4049_v37 }
 0x2c8   : > { %4054 = vmatprep.subr.bf16.mxu1 %v4053_v36 }
 0x2ca   : > { %2830 = vmatmul.mubr.f32.gmra.mrb[34].mxu1 %v5050_v11 }
 0x2cb   : > { %2834 = vmatprep.mubr.f32.mxu1 %v4391_v0  ;;  %4056 = vmatpush3.bf16.msra.mxu1 %v4053_v36 }
 0x2cc   : > { %4058 = vmatprep.subr.bf16.mxu1 %v4057_v42 }
 0x2ce   : > { %2835 = vmatmul.mubr.f32.gmra.mrb[36].mxu1 %v5052_v18 }
 0x2cf   : > { %2840 = vmatprep.mubr.f32.mxu1 %v4391_v0  ;;  %4060 = vmatpush3.bf16.msra.mxu1 %v4057_v42 }
 0x2d0   : > { %4062 = vmatprep.subr.bf16.mxu1 %v4061_v55 }
 0x2d2   : > { %2841 = vmatmul.mubr.f32.gmra.mrb[38].mxu1 %v5056_v25 }
 0x2d3   : > { %2846 = vmatprep.mubr.f32.mxu1 %v4391_v0  ;;  %4064 = vmatpush3.bf16.msra.mxu1 %v4061_v55 }
 0x2d4   : > { %4066 = vmatprep.subr.bf16.mxu1 %v4065_v60 }
 0x2d6   : > { %2847 = vmatmul.mubr.f32.gmra.mrb[40].mxu1 %v5058_v32 }
 0x2d7   : > { %2851 = vmatprep.mubr.f32.mxu1 %v4391_v0  ;;  %4068 = vmatpush3.bf16.msra.mxu1 %v4065_v60 }
 0x2d8   : > { %4070 = vmatprep.subr.bf16.mxu1 %v4069_v48 }
 0x2da   : > { %2852 = vmatmul.mubr.f32.gmra.mrb[42].mxu1 %v5062_v43 }
 0x2db   : > { %2857 = vmatprep.mubr.f32.mxu1 %v4391_v0  ;;  %4072 = vmatpush3.bf16.msra.mxu1 %v4069_v48 }
 0x2dc   : > { %4074 = vmatprep.subr.bf16.mxu1 %v4073_v63 }
 0x2de   : > { %2858 = vmatmul.mubr.f32.gmra.mrb[44].mxu1 %v5064_v50 }
 0x2df   : > { %2863 = vmatprep.mubr.f32.mxu1 %v4391_v0  ;;  %4076 = vmatpush3.bf16.msra.mxu1 %v4073_v63 }
 0x2e2   : > { %2864 = vmatmul.mubr.f32.gmra.mrb[46].mxu1 %v5068_v57 }
 0x2e3   : > { %2868 = vmatprep.mubr.f32.mxu1 %v4391_v0 }
 0x2e6   : > { %2869 = vmatmul.mubr.f32.gmra.mrb[48].mxu1 %v2701_v1 }
 0x2e7   : > { %2874 = vmatprep.mubr.f32.mxu1 %v4391_v0 }
 0x2ea   : > { %2875 = vmatmul.mubr.f32.gmra.mrb[50].mxu1 %v2702_v4 }
 0x2eb   : > { %2880 = vmatprep.mubr.f32.mxu1 %v4391_v0 }
 0x2ee   : > { %2881 = vmatmul.mubr.f32.gmra.mrb[52].mxu1 %v2703_v5 }
 0x2ef   : > { %3867 = vmatprep.mubr.f32.mxu1 %v5044_v62 }
 0x2f2   : > { %3868 = vmatmul.mubr.f32.vlgmr.msra.gmra.mrb[18].mxu1 %v5046_v2 }
 0x2f3   : > { %3870 = vmatprep.mubr.f32.mxu1 %v5050_v11 }
 0x2f6   : > { %3871 = vmatmul.mubr.f32.gmra.mrb[20].mxu1 %v5052_v18 }
 0x2f7   : > { %3873 = vmatprep.mubr.f32.mxu1 %v5056_v25 }
 0x2fa   : > { %3874 = vmatmul.mubr.f32.gmra.mrb[22].mxu1 %v5058_v32 }
 0x2fb   : > { %3876 = vmatprep.mubr.f32.mxu1 %v5062_v43 }
 0x2fe   : > { %3877 = vmatmul.mubr.f32.gmra.mrb[24].mxu1 %v5064_v50 }
 0x2ff   : > { %3879 = vmatprep.mubr.f32.mxu1 %v5068_v57 }
 0x302   : > { %3880 = vmatmul.mubr.f32.gmra.mrb[26].mxu1 %v2701_v1 }
 0x303   : > { %3882 = vmatprep.mubr.f32.mxu1 %v2702_v4 }
 0x306   : > { %3883 = vmatmul.mubr.f32.gmra.mrb[28].mxu1 %v2703_v5 }
 0x333   : > { %v2241_v0 = vpop.f32.mrb[42].mxu0 }
 0x334   : > { %v2243_v62 = vpop.f32.mrb[43].mxu0 }
 0x337   : > { %v2247_v2 = vpop.f32.mrb[44].mxu0 }
 0x338   : > { %v2249_v6 = vpop.f32.mrb[45].mxu0 }
 0x33b   : > { %v2253_v11 = vpop.f32.mrb[46].mxu0 }
 0x33c   : > { %v2254_v7 = vpop.f32.mrb[47].mxu0 }
 0x33f   : > { %v2258_v18 = vpop.f32.mrb[48].mxu0 }
 0x340   : > { %v2260_v8 = vpop.f32.mrb[49].mxu0 }
 0x343   : > { %v2264_v25 = vpop.f32.mrb[50].mxu0 }
 0x344   : > { %v2266_v9 = vpop.f32.mrb[51].mxu0 }
 0x347   : > { %v2270_v32 = vpop.f32.mrb[52].mxu0 }
 0x348   : > { %v2271_v10 = vpop.f32.mrb[53].mxu0 }
 0x34b   : > { %v2275_v43 = vpop.f32.mrb[54].mxu0 }
 0x34c   : > { %v2277_v13 = vpop.f32.mrb[55].mxu0 }
 0x34f   : > { %v2281_v50 = vpop.f32.mrb[56].mxu0 }
 0x350   : > { %v2283_v12 = vpop.f32.mrb[57].mxu0 }
 0x353   : > { %v2287_v57 = vpop.f32.mrb[58].mxu0 }
 0x354   : > { %v2288_v15 = vpop.f32.mrb[59].mxu0 }
 0x357   : > { %v2292_v14 = vpop.f32.mrb[60].mxu0 }
 0x358   : > { %v2294_v16 = vpop.f32.mrb[61].mxu0 }
 0x35b   : > { %v5166_v44 = vpop.f32.mrb[62].mxu0 }
 0x35c   : > { %v5168_v17 = vpop.f32.mrb[63].mxu0 }
 0x35f   : > { %v2304_v19 = vpop.f32.mrb[64].mxu0 }
 0x360   : > { %v5170_v52 = vpop.f32.mrb[65].mxu0 }
 0x395   : > { %v2819_v20 = vpop.f32.mrb[30].mxu1 }
 0x396   : > { %v4085_v26 = vadd.f32 %v2819_v20, %v2241_v0  ;;  %v2821_v21 = vpop.f32.mrb[31].mxu1 }
 0x397   : > { %v4086_v22 = vadd.f32 %v2821_v21, %v2243_v62 }
 0x399   : > { %v2825_v23 = vpop.f32.mrb[32].mxu1  ;;  %v3055_v29 = vrot.slane %v4086_v22, 1 }
 0x39a   : > { %v4087_v24 = vadd.f32 %v2825_v23, %v2247_v2  ;;  %v2827_v28 = vpop.f32.mrb[33].mxu1 }
 0x39b   : > { %v4088_v27 = vadd.f32 %v2827_v28, %v2249_v6 }
 0x39d   : > { %v3056_v30 = vrot.slane %v4088_v27, 1  ;;  %v2831_v31 = vpop.f32.mrb[34].mxu1 }
 0x39e   : > { %v2832_v33 = vpop.f32.mrb[35].mxu1 }
 0x39f   : > { %v3057_v34 = vsel %vm1835_vm4, %v3055_v29, %v3056_v30  ;;  %v4089_v38 = vadd.f32 %v2832_v33, %v2254_v7 }
 0x3a0   : > { %v5173_v39 = vadd.f32 %v4085_v26, %v3057_v34 }
 0x3a1   : > { %v3058_v35 = vrot.slane %v4089_v38, 1  ;;  %v2836_v40 = vpop.f32.mrb[36].mxu1 }
 0x3a2   : > { %v4090_v41 = vadd.f32 %v2836_v40, %v2258_v18  ;;  %v2838_v37 = vpop.f32.mrb[37].mxu1 }
 0x3a3   : > { %v3059_v45 = vsel %vm1835_vm4, %v3056_v30, %v3058_v35  ;;  %v4091_v46 = vadd.f32 %v2838_v37, %v2260_v8 }
 0x3a4   : > { %v5176_v36 = vadd.f32 %v4087_v24, %v3059_v45 }
 0x3a5   : > { %v2842_v49 = vpop.f32.mrb[38].mxu1  ;;  %v3060_v54 = vrot.slane %v4091_v46, 1 }
 0x3a6   : > { %v4092_v51 = vadd.f32 %v2842_v49, %v2264_v25  ;;  %v2844_v42 = vpop.f32.mrb[39].mxu1 }
 0x3a7   : > { %v4093_v53 = vadd.f32 %v2844_v42, %v2266_v9 }
 0x3a9   : > { %v3061_v55 = vrot.slane %v4093_v53, 1  ;;  %v2848_v56 = vpop.f32.mrb[40].mxu1 }
 0x3aa   : > { %v2849_v58 = vpop.f32.mrb[41].mxu1 }
 0x3ab   : > { %v3062_v60 = vsel %vm1835_vm4, %v3060_v54, %v3061_v55  ;;  %v4094_v61 = vadd.f32 %v2849_v58, %v2271_v10 }
 0x3ac   : > { %v5179_v47 = vadd.f32 %v4090_v41, %v3062_v60 }
 0x3ad   : > { %v3063_v48 = vrot.slane %v4094_v61, 1  ;;  %v2853_v59 = vpop.f32.mrb[42].mxu1 }
 0x3ae   : > { %v4095_v3 = vadd.f32 %v2853_v59, %v2275_v43  ;;  %v2855_v63 = vpop.f32.mrb[43].mxu1 }
 0x3af   : > { %v3064_v1 = vsel %vm1835_vm4, %v3061_v55, %v3063_v48  ;;  %v4096_v4 = vadd.f32 %v2855_v63, %v2277_v13 }
 0x3b0   : > { %v3086_v5 = vadd.f32 %v4092_v51, %v3064_v1 }
 0x3b1   : > { %v2859_v0 = vpop.f32.mrb[44].mxu1  ;;  %v3065_v11 = vrot.slane %v4096_v4, 1 }
 0x3b2   : > { %v4097_v62 = vadd.f32 %v2859_v0, %v2281_v50  ;;  %v2861_v2 = vpop.f32.mrb[45].mxu1 }
 0x3b3   : > { %v4098_v6 = vadd.f32 %v2861_v2, %v2283_v12 }
 0x3b5   : > { %v3066_v7 = vrot.slane %v4098_v6, 1  ;;  %v2865_v18 = vpop.f32.mrb[46].mxu1 }
 0x3b6   : > { %v2866_v8 = vpop.f32.mrb[47].mxu1 }
 0x3b7   : > { %v3067_v25 = vsel %vm1835_vm4, %v3065_v11, %v3066_v7  ;;  %v4099_v9 = vadd.f32 %v2866_v8, %v2288_v15 }
 0x3b8   : > { %v5183_v32 = vadd.f32 %v4095_v3, %v3067_v25 }
 0x3b9   : > { %v3068_v10 = vrot.slane %v4099_v9, 1  ;;  %v2870_v43 = vpop.f32.mrb[48].mxu1 }
 0x3ba   : > { %v4100_v57 = vadd.f32 %v2870_v43, %v2292_v14  ;;  %v2872_v19 = vpop.f32.mrb[49].mxu1 }
 0x3bb   : > { %v3069_v13 = vsel %vm1835_vm4, %v3066_v7, %v3068_v10  ;;  %v4101_v20 = vadd.f32 %v2872_v19, %v2294_v16 }
 0x3bc   : > { %v5186_v26 = vadd.f32 %v4097_v62, %v3069_v13 }
 0x3bd   : > { %v2876_v50 = vpop.f32.mrb[50].mxu1  ;;  %v3070_v23 = vrot.slane %v4101_v20, 1 }
 0x3be   : > { %v4102_v12 = vadd.f32 %v2876_v50, %v5166_v44  ;;  %v2878_v21 = vpop.f32.mrb[51].mxu1 }
 0x3bf   : > { %v4103_v22 = vadd.f32 %v2878_v21, %v5168_v17  ;;  %v5200_v17 = vld [vmem:[%s5254_s6] ss:$0 sm:$0xff] }
 0x3c1   : > { %v3071_v24 = vrot.slane %v4103_v22, 1  ;;  %v2882_v15 = vpop.f32.mrb[52].mxu1 }
 0x3c2   : > { %v2883_v28 = vpop.f32.mrb[53].mxu1 }
 0x3c3   : > { %v3072_v27 = vsel %vm1835_vm4, %v3070_v23, %v3071_v24  ;;  %v4104_v14 = vadd.f32 %v2883_v28, %v5170_v52 }
 0x3c4   : > { %v5192_v29 = vadd.f32 %v4100_v57, %v3072_v27 }
 0x3c5   : > { %v3073_v30 = vrot.slane %v4104_v14, 1  ;;  %v3869_v16 = vpop.f32.mrb[18].mxu1 }
 0x3c6   : > { %v3104_v31 = vrot.slane %v3869_v16, 2  ;;  %v2952_v33 = vpop.f32.mrb[19].mxu1 }
 0x3c7   : > { %v3074_v34 = vsel %vm1835_vm4, %v3071_v24, %v3073_v30  ;;  %v3103_v44 = vrot.slane %v2952_v33, 2 }
 0x3c8   : > { %v5195_v38 = vadd.f32 %v4102_v12, %v3074_v34 }
 0x3c9   : > { %v3105_v35 = vsel %vm1908_vm3, %v3103_v44, %v3104_v31  ;;  %v3872_v40 = vpop.f32.mrb[20].mxu1 }
 0x3ca   : > { %v3131_v52 = vadd.f32 %v3105_v35, %v5173_v39  ;;  %v2962_v41 = vpop.f32.mrb[21].mxu1  ;;  %v3108_v55 = vrot.slane %v3872_v40, 2 }
 0x3cb   : > { %v3106_v37 = vrot.slane %v2962_v41, 2 }
 0x3cc   : > { %v3145_v45 = vadd.f32 %v5200_v17, %v3131_v52 }
 0x3cd   : > { %v3107_v46 = vsel %vm1908_vm3, %v3104_v31, %v3106_v37  ;;  %v3875_v49 = vpop.f32.mrb[22].mxu1 }
 0x3ce   : > { %vm3153_vm1 = vcmp.ge.f32.partialorder %v3145_v45, 0.0  ;;  %v3161_v51 = vmul.f32 0.125, %v3145_v45  ;;  %v3132_v42 = vadd.f32 %v3107_v46, %v5176_v36  ;;  %v3111_v53 = vrot.slane %v3875_v49, 2  ;;  %v2972_v54 = vpop.f32.mrb[23].mxu1 }
 0x3cf   : > { %v3109_v56 = vrot.slane %v2972_v54, 2 }
 0x3d0   : > { %v3169_v58 = vsel %vm3153_vm1, %v3145_v45, %v3161_v51  ;;  %v3146_v60 = vadd.f32 %v5200_v17, %v3132_v42 }
 0x3d1   : > { %3177 = vst [vmem:[%s4556_s23] sm:$0xff] %v3169_v58  ;;  %v3110_v39 = vsel %vm1908_vm3, %v3108_v55, %v3109_v56  ;;  %v3112_v61 = vsel %vm1908_vm3, %v3109_v56, %v3111_v53  ;;  %v3878_v48 = vpop.f32.mrb[24].mxu1 }
 0x3d2   : > { %vm3154_vm2 = vcmp.ge.f32.partialorder %v3146_v60, 0.0  ;;  %v3162_v59 = vmul.f32 0.125, %v3146_v60  ;;  %v3133_v3 = vadd.f32 %v3110_v39, %v5179_v47  ;;  %v3134_v63 = vadd.f32 %v3112_v61, %v3086_v5  ;;  %v2982_v36 = vpop.f32.mrb[25].mxu1 }
 0x3d3   : > { %v3114_v1 = vrot.slane %v3878_v48, 2  ;;  %v3113_v4 = vrot.slane %v2982_v36, 2 }
 0x3d4   : > { %v3170_v0 = vsel %vm3154_vm2, %v3146_v60, %v3162_v59  ;;  %v3147_v62 = vadd.f32 %v5200_v17, %v3133_v3  ;;  %v3148_v2 = vadd.f32 %v5200_v17, %v3134_v63 }
 0x3d5   : > { %3178 = vst [vmem:[%s4556_s23 + $0x8] sm:$0xff] %v3170_v0  ;;  %v3115_v6 = vsel %vm1908_vm3, %v3113_v4, %v3114_v1  ;;  %v3881_v11 = vpop.f32.mrb[26].mxu1 }
 0x3d6   : > { %vm3155_vm4 = vcmp.ge.f32.partialorder %v3147_v62, 0.0  ;;  %vm3156_vm5 = vcmp.ge.f32.partialorder %v3148_v2, 0.0  ;;  %v3163_v7 = vmul.f32 0.125, %v3147_v62  ;;  %v3164_v18 = vmul.f32 0.125, %v3148_v2  ;;  %v2992_v47 = vpop.f32.mrb[27].mxu1 }
 0x3d7   : > { %v3135_v5 = vadd.f32 %v3115_v6, %v5183_v32  ;;  %v3116_v8 = vrot.slane %v2992_v47, 2  ;;  %v3118_v12 = vrot.slane %v3881_v11, 2 }
 0x3d8   : > { %v3171_v25 = vsel %vm3155_vm4, %v3147_v62, %v3163_v7  ;;  %v3172_v9 = vsel %vm3156_vm5, %v3148_v2, %v3164_v18 }
 0x3d9   : > { %3179 = vst [vmem:[%s4556_s23 + $0x10] sm:$0xff] %v3171_v25  ;;  %3180 = vst [vmem:[%s4556_s23 + $0x18] sm:$0xff] %v3172_v9  ;;  %v3149_v10 = vadd.f32 %v5200_v17, %v3135_v5  ;;  %v3117_v43 = vsel %vm1908_vm3, %v3114_v1, %v3116_v8  ;;  %v3884_v57 = vpop.f32.mrb[28].mxu1 }
 0x3da   : > { %v3136_v19 = vadd.f32 %v3117_v43, %v5186_v26  ;;  %v3121_v13 = vrot.slane %v3884_v57, 2  ;;  %v3002_v20 = vpop.f32.mrb[29].mxu1 }
 0x3db   : > { %vm3157_vm6 = vcmp.ge.f32.partialorder %v3149_v10, 0.0  ;;  %v3165_v50 = vmul.f32 0.125, %v3149_v10  ;;  %v3119_v32 = vrot.slane %v3002_v20, 2 }
 0x3dc   : > { %v3150_v21 = vadd.f32 %v5200_v17, %v3136_v19 }
 0x3dd   : > { %v3173_v22 = vsel %vm3157_vm6, %v3149_v10, %v3165_v50  ;;  %v3120_v23 = vsel %vm1908_vm3, %v3118_v12, %v3119_v32  ;;  %v3122_v24 = vsel %vm1908_vm3, %v3119_v32, %v3121_v13 }
 0x3de   : > { %3181 = vst [vmem:[%s4556_s23 + $0x20] sm:$0xff] %v3173_v22  ;;  %vm3158_vm7 = vcmp.ge.f32.partialorder %v3150_v21, 0.0  ;;  %v3166_v15 = vmul.f32 0.125, %v3150_v21  ;;  %v3137_v26 = vadd.f32 %v3120_v23, %v5192_v29  ;;  %v3138_v28 = vadd.f32 %v3122_v24, %v5195_v38 }
 0x3e0   : > { %v3174_v27 = vsel %vm3158_vm7, %v3150_v21, %v3166_v15  ;;  %v3151_v14 = vadd.f32 %v5200_v17, %v3137_v26  ;;  %v3152_v30 = vadd.f32 %v5200_v17, %v3138_v28 }
 0x3e1   : > { %3182 = vst [vmem:[%s4556_s23 + $0x28] sm:$0xff] %v3174_v27 }
 0x3e2   : > { %vm3159_vm8 = vcmp.ge.f32.partialorder %v3151_v14, 0.0  ;;  %vm3160_vm9 = vcmp.ge.f32.partialorder %v3152_v30, 0.0  ;;  %v3167_v16 = vmul.f32 0.125, %v3151_v14  ;;  %v3168_v31 = vmul.f32 0.125, %v3152_v30 }
 0x3e4   : > { %v3175_v33 = vsel %vm3159_vm8, %v3151_v14, %v3167_v16  ;;  %v3176_v34 = vsel %vm3160_vm9, %v3152_v30, %v3168_v31 }
 0x3e5   : > { %3183 = vst [vmem:[%s4556_s23 + $0x30] sm:$0xff] %v3175_v33  ;;  %3184 = vst [vmem:[%s4556_s23 + $0x38] sm:$0xff] %v3176_v34 }
 0x3e6 PF: > { %s18_s28 = sadd.s32 1, %s4386_s28   ;;  %s5264_s24 = smov %s4378_s26 }
 0x3e7   : > { %p15_p4 = scmp.ge.s32.totalorder %s18_s28, 10   ;;  %s5265_s25 = smov %s4382_s27 }
 0x3e8   : > { %s5266_s26 = smov %s5269_s30  ;;  %s5267_s27 = smov %s5273_s8 }
 0x3e9   :  { %17 = sbr.rel (!%p15_p4) target bundleno = 3 (0x3), region = 124 }
 0x3f0   :  { %3217 = vsyncpa [#allocation5], 1 }
 0x3f1   :  { %3219 = vsyncpa [#allocation5 + $0x1], 1 }

</bundles_post_ra>
